<compile_context>
chip_gen: v6e
topology: v6e:2x2x1
jax: 0.10.0
libtpu: 0.0.40
codegen_flags: <defaults>
</compile_context>

<pallas_src>
import functools

import jax
import jax.numpy as jnp
from jax.experimental import pallas as pl
from jax.experimental.pallas import tpu as pltpu


# --------------------------------------------------------------------------- #
# Kernel
# --------------------------------------------------------------------------- #
def _propnet_kernel(pstep, bblk, n_particles, n_rel, compute_dtype,
                    # per-grid-step data refs (Bblk batch elements, row-fused)
                    st_ref, rr_ref, rrT_ref, rsT_ref, ra_ref,
                    # particle encoder
                    pe_w0, pe_b0, pe_w1, pe_b1, pe_w2, pe_b2,
                    # relation encoder (first layer weight split across the concat)
                    re_w0r, re_w0s, re_w0a, re_b0, re_w1, re_b1, re_w2, re_b2,
                    # relation propagator (weight split across the concat)
                    rp_wre, rp_wer, rp_wes, rp_b,
                    # particle propagator (weight split across the concat)
                    pp_wenc, pp_wagg, pp_b,
                    # particle predictor (last layer zero-padded to 128 lanes)
                    pr_w0, pr_b0, pr_w1, pr_b1,
                    # output (Bblk*N, 128)
                    out_ref):
    f32 = jnp.float32
    relu = jax.nn.relu
    N = n_particles
    R = n_rel

    def mm(a, b):
        return jnp.dot(a.astype(compute_dtype), b.astype(compute_dtype),
                       preferred_element_type=f32)

    def per_batch(op):
        """Concatenate op(b) for the Bblk batch elements of this grid step."""
        pieces = [op(b) for b in range(bblk)]
        return pieces[0] if bblk == 1 else jnp.concatenate(pieces, axis=0)

    st = st_ref[...]                                     # (Bblk*N, Din)

    # ---- ParticleEncoder: relu(L0) -> relu(L1) -> relu(L2), batch-fused ------
    pe = relu(mm(st, pe_w0[...]) + pe_b0[...])
    pe = relu(mm(pe, pe_w1[...]) + pe_b1[...])
    pe = relu(mm(pe, pe_w2[...]) + pe_b2[...])           # (Bblk*N, E)

    # ---- RelationEncoder on cat([state_r, state_s, Ra], -1), batch-fused -----
    # state_r = Rr^T @ state ; state_s = Rs^T @ state (per-batch incidence bmm)
    state_r = per_batch(lambda b: mm(rrT_ref[b], st[b * N:(b + 1) * N, :]))
    state_s = per_batch(lambda b: mm(rsT_ref[b], st[b * N:(b + 1) * N, :]))

    re = relu(mm(state_r, re_w0r[...]) + mm(state_s, re_w0s[...])
              + mm(ra_ref[...], re_w0a[...]) + re_b0[...])
    re = relu(mm(re, re_w1[...]) + re_b1[...])
    re = relu(mm(re, re_w2[...]) + re_b2[...])           # (Bblk*R, Q)

    # Effect-independent terms, hoisted out of the propagation loop.
    rel_base = mm(re, rp_wre[...]) + rp_b[...]           # (Bblk*R, E)
    part_base = mm(pe, pp_wenc[...]) + pp_b[...]         # (Bblk*N, E)

    # ---- propagation (non-residual Propagators: relu(Linear(cat(...)))) ------
    # Step 0 peeled: particle_effect starts at zero, so eff_r = eff_s = 0 and
    # four matmuls are skipped for free.
    if pstep >= 1:
        rel_eff = relu(rel_base)                                       # (Bblk*R, E)
        agg = per_batch(
            lambda b: mm(rr_ref[b], rel_eff[b * R:(b + 1) * R, :]))    # (Bblk*N, E)
        effect = relu(part_base + mm(agg, pp_wagg[...]))
    else:
        effect = jnp.zeros(part_base.shape, dtype=f32)

    # Remaining steps (pstep is small; unrolled).  For large pstep switch to
    # lax.fori_loop(..., unroll=True) carrying `effect`.
    for _ in range(pstep - 1):
        eff_r = per_batch(
            lambda b: mm(rrT_ref[b], effect[b * N:(b + 1) * N, :]))    # (Bblk*R, E)
        eff_s = per_batch(
            lambda b: mm(rsT_ref[b], effect[b * N:(b + 1) * N, :]))
        rel_eff = relu(rel_base + mm(eff_r, rp_wer[...]) + mm(eff_s, rp_wes[...]))
        agg = per_batch(
            lambda b: mm(rr_ref[b], rel_eff[b * R:(b + 1) * R, :]))    # (Bblk*N, E)
        effect = relu(part_base + mm(agg, pp_wagg[...]))

    # ---- ParticlePredictor: L1(relu(L0(x))), lane-dense padded output --------
    hidden = relu(mm(effect, pr_w0[...]) + pr_b0[...])
    pred = mm(hidden, pr_w1[...]) + pr_b1[...]           # (Bblk*N, OPAD)

    out_ref[...] = pred.astype(out_ref.dtype)


# --------------------------------------------------------------------------- #
# Wrapper
# --------------------------------------------------------------------------- #
def propnet_forward(params, attr, state, Rr, Rs, Ra, action=None, pstep=2,
                    bblk=None, matmul_dtype=jnp.float32):
    """PropNet.forward for config.observation == 'full' (batch=True)."""
    parts = [attr, state] + ([action] if action is not None else [])
    st = jnp.concatenate(parts, axis=2).astype(jnp.float32)

    B, N, Din = st.shape
    R = Rr.shape[2]
    Dr = Ra.shape[2]
    O = params["pr_b1"].shape[-1]
    OPAD = max(128, pl.cdiv(O, 128) * 128)   # lane-dense output width

    # Batch block size: fuse as much batch as possible into the row dimension
    # while keeping >= 2 grid steps when B >= 2 (feeds both v7x TensorCores).
    if bblk is None:
        bblk = 1
        if B > 1:
            for cand in range(B // 2, 0, -1):
                if B % cand == 0:
                    bblk = cand
                    break
    assert B % bblk == 0, "batch must be divisible by the batch block size"
    grid = (B // bblk,)

    # Row-fused activations and precomputed transposes (no in-kernel .T).
    st2 = st.reshape(B * N, Din)
    Rr_f = Rr.astype(jnp.float32)
    RrT = jnp.swapaxes(Rr_f, 1, 2)                      # (B, R, N)
    RsT = jnp.swapaxes(Rs.astype(jnp.float32), 1, 2)    # (B, R, N)
    Ra2 = Ra.astype(jnp.float32).reshape(B * R, Dr)

    # Zero-pad the predictor's last layer to OPAD output lanes.
    pr_w1 = params["pr_w1"].astype(jnp.float32)
    pr_b1 = params["pr_b1"].astype(jnp.float32)
    pr_w1p = jnp.zeros((pr_w1.shape[0], OPAD), jnp.float32).at[:, :O].set(pr_w1)
    pr_b1p = jnp.zeros((1, OPAD), jnp.float32).at[:, :O].set(pr_b1)

    wdict = dict(params)
    wdict["pr_w1"] = pr_w1p
    wdict["pr_b1"] = pr_b1p

    param_order = [
        "pe_w0", "pe_b0", "pe_w1", "pe_b1", "pe_w2", "pe_b2",
        "re_w0r", "re_w0s", "re_w0a", "re_b0", "re_w1", "re_b1", "re_w2", "re_b2",
        "rp_wre", "rp_wer", "rp_wes", "rp_b",
        "pp_wenc", "pp_wagg", "pp_b",
        "pr_w0", "pr_b0", "pr_w1", "pr_b1",
    ]

    def prep(name):
        arr = wdict[name].astype(jnp.float32)
        if "_b" in name:          # biases stay f32 (added to f32 accumulators)
            return arr
        return arr.astype(matmul_dtype)

    weight_args = [prep(k) for k in param_order]

    in_specs = [
        pl.BlockSpec((bblk * N, Din), lambda i: (i, 0)),     # st2
        pl.BlockSpec((bblk, N, R), lambda i: (i, 0, 0)),     # Rr
        pl.BlockSpec((bblk, R, N), lambda i: (i, 0, 0)),     # Rr^T
        pl.BlockSpec((bblk, R, N), lambda i: (i, 0, 0)),     # Rs^T
        pl.BlockSpec((bblk * R, Dr), lambda i: (i, 0)),      # Ra2
    ] + [pl.BlockSpec(w.shape, lambda i: (0, 0)) for w in weight_args]
    # NOTE: weight index maps are constant, so Pallas does not re-DMA them per
    # grid step; pipeline_mode=pl.Buffered(1) could further halve their VMEM
    # footprint when scaling up.

    out_spec = pl.BlockSpec((bblk * N, OPAD), lambda i: (i, 0))

    kernel = functools.partial(_propnet_kernel, pstep, bblk, N, R, matmul_dtype)

    out_padded = pl.pallas_call(
        kernel,
        out_shape=jax.ShapeDtypeStruct((B * N, OPAD), jnp.float32),
        grid=grid,
        in_specs=in_specs,
        out_specs=out_spec,
        compiler_params=pltpu.CompilerParams(
            dimension_semantics=("parallel",),
            vmem_limit_bytes=32 * 1024 * 1024),
    )(st2, Rr_f, RrT, RsT, Ra2, *weight_args)

    return out_padded.reshape(B, N, OPAD)[:, :, :O]


# --------------------------------------------------------------------------- #
# Pure-JAX reference (mirrors the PyTorch semantics) for validation
# --------------------------------------------------------------------------- #
def propnet_reference(params, attr, state, Rr, Rs, Ra, action=None, pstep=2):
    st = jnp.concatenate([attr, state] + ([action] if action is not None else []),
                         axis=2).astype(jnp.float32)
    relu = jax.nn.relu
    Rrp = jnp.swapaxes(Rr, 1, 2)
    Rsp = jnp.swapaxes(Rs, 1, 2)
    state_r = jnp.einsum("brn,bnd->brd", Rrp, st)
    state_s = jnp.einsum("brn,bnd->brd", Rsp, st)

    pe = relu(st @ params["pe_w0"] + params["pe_b0"])
    pe = relu(pe @ params["pe_w1"] + params["pe_b1"])
    pe = relu(pe @ params["pe_w2"] + params["pe_b2"])

    re = relu(state_r @ params["re_w0r"] + state_s @ params["re_w0s"]
              + Ra @ params["re_w0a"] + params["re_b0"])
    re = relu(re @ params["re_w1"] + params["re_b1"])
    re = relu(re @ params["re_w2"] + params["re_b2"])

    B, N, _ = st.shape
    E = params["pp_b"].shape[-1]
    effect = jnp.zeros((B, N, E), dtype=jnp.float32)
    for _ in range(pstep):
        eff_r = jnp.einsum("brn,bne->bre", Rrp, effect)
        eff_s = jnp.einsum("brn,bne->bre", Rsp, effect)
        rel_eff = relu(re @ params["rp_wre"] + eff_r @ params["rp_wer"]
                       + eff_s @ params["rp_wes"] + params["rp_b"])
        agg = jnp.einsum("bnr,bre->bne", Rr, rel_eff)
        effect = relu(pe @ params["pp_wenc"] + agg @ params["pp_wagg"]
                      + params["pp_b"])

    hidden = relu(effect @ params["pr_w0"] + params["pr_b0"])
    return hidden @ params["pr_w1"] + params["pr_b1"]


# --------------------------------------------------------------------------- #
# Deterministic parameter init (synthetic; shapes follow PropModule.__init__)
# --------------------------------------------------------------------------- #
def init_params(key, input_dim, relation_dim, nf_particle, nf_relation,
                nf_effect, position_dim):
    shapes = {
        # ParticleEncoder(input_dim, nf_particle, nf_effect)
        "pe_w0": (input_dim, nf_particle), "pe_b0": (1, nf_particle),
        "pe_w1": (nf_particle, nf_particle), "pe_b1": (1, nf_particle),
        "pe_w2": (nf_particle, nf_effect), "pe_b2": (1, nf_effect),
        # RelationEncoder(2*input_dim + relation_dim, nf_relation, nf_relation)
        # first layer weight split across [state_r | state_s | Ra]
        "re_w0r": (input_dim, nf_relation), "re_w0s": (input_dim, nf_relation),
        "re_w0a": (relation_dim, nf_relation), "re_b0": (1, nf_relation),
        "re_w1": (nf_relation, nf_relation), "re_b1": (1, nf_relation),
        "re_w2": (nf_relation, nf_relation), "re_b2": (1, nf_relation),
        # relation Propagator(nf_relation + 2*nf_effect, nf_effect)
        "rp_wre": (nf_relation, nf_effect), "rp_wer": (nf_effect, nf_effect),
        "rp_wes": (nf_effect, nf_effect), "rp_b": (1, nf_effect),
        # particle Propagator(2*nf_effect, nf_effect)
        "pp_wenc": (nf_effect, nf_effect), "pp_wagg": (nf_effect, nf_effect),
        "pp_b": (1, nf_effect),
        # ParticlePredictor(nf_effect, nf_effect, position_dim)
        "pr_w0": (nf_effect, nf_effect), "pr_b0": (1, nf_effect),
        "pr_w1": (nf_effect, position_dim), "pr_b1": (1, position_dim),
    }
    params = {}
    keys = jax.random.split(key, len(shapes))
    for k, (name, shape) in zip(keys, sorted(shapes.items())):
        params[name] = (0.1 * jax.random.normal(k, shape)).astype(jnp.float32)
    return params


# --------------------------------------------------------------------------- #
# Main
# --------------------------------------------------------------------------- #
if __name__ == "__main__":
    # small config ('full' observation mode)
    B, N, R = 4, 16, 32
    attr_dim, state_dim, action_dim = 3, 4, 2
    relation_dim, position_dim = 3, 3
    nf_particle = nf_relation = nf_effect = 32
    pstep = 2
    input_dim = attr_dim + state_dim + action_dim

    key = jax.random.PRNGKey(0)
    k_attr, k_state, k_act, k_rr, k_rs, k_ra, k_par = jax.random.split(key, 7)

    attr = jax.random.normal(k_attr, (B, N, attr_dim), dtype=jnp.float32)
    state = jax.random.normal(k_state, (B, N, state_dim), dtype=jnp.float32)
    action = jax.random.normal(k_act, (B, N, action_dim), dtype=jnp.float32)
    # relation incidence-like matrices (binary) and relation attributes
    Rr = (jax.random.uniform(k_rr, (B, N, R)) < 0.15).astype(jnp.float32)
    Rs = (jax.random.uniform(k_rs, (B, N, R)) < 0.15).astype(jnp.float32)
    Ra = jax.random.normal(k_ra, (B, R, relation_dim), dtype=jnp.float32)

    params = init_params(k_par, input_dim, relation_dim, nf_particle,
                         nf_relation, nf_effect, position_dim)

    # f32 kernel, checked against the pure-JAX reference.
    out = propnet_forward(params, attr, state, Rr, Rs, Ra,
                          action=action, pstep=pstep)
    out = jax.block_until_ready(out)

    ref = propnet_reference(params, attr, state, Rr, Rs, Ra,
                            action=action, pstep=pstep)
    assert out.shape == (B, N, position_dim)
    assert jnp.allclose(out, ref, atol=1e-4, rtol=1e-4), "mismatch vs reference"

    # Optional bf16 matmul-operand path (for v6e/v7x MXU throughput) — smoke
    # test only: accumulation stays f32, but bf16 operand rounding is outside
    # the strict f32 tolerance above.
    out_bf16 = propnet_forward(params, attr, state, Rr, Rs, Ra,
                               action=action, pstep=pstep,
                               matmul_dtype=jnp.bfloat16)
    out_bf16 = jax.block_until_ready(out_bf16)
    assert out_bf16.shape == (B, N, position_dim)
    assert bool(jnp.isfinite(out_bf16).all())

    print("KERNEL_OK")
</pallas_src>

<mosaic_0001>
module attributes {stable_mosaic.version = 11 : i64} {
  func.func @_propnet_kernel(%arg0: i32, %arg1: memref<32x9xf32, #tpu.memory_space<vmem>>, %arg2: memref<2x16x32xf32, #tpu.memory_space<vmem>>, %arg3: memref<2x32x16xf32, #tpu.memory_space<vmem>>, %arg4: memref<2x32x16xf32, #tpu.memory_space<vmem>>, %arg5: memref<64x3xf32, #tpu.memory_space<vmem>>, %arg6: memref<9x32xf32, #tpu.memory_space<vmem>>, %arg7: memref<1x32xf32, #tpu.memory_space<vmem>>, %arg8: memref<32x32xf32, #tpu.memory_space<vmem>>, %arg9: memref<1x32xf32, #tpu.memory_space<vmem>>, %arg10: memref<32x32xf32, #tpu.memory_space<vmem>>, %arg11: memref<1x32xf32, #tpu.memory_space<vmem>>, %arg12: memref<9x32xf32, #tpu.memory_space<vmem>>, %arg13: memref<9x32xf32, #tpu.memory_space<vmem>>, %arg14: memref<3x32xf32, #tpu.memory_space<vmem>>, %arg15: memref<1x32xf32, #tpu.memory_space<vmem>>, %arg16: memref<32x32xf32, #tpu.memory_space<vmem>>, %arg17: memref<1x32xf32, #tpu.memory_space<vmem>>, %arg18: memref<32x32xf32, #tpu.memory_space<vmem>>, %arg19: memref<1x32xf32, #tpu.memory_space<vmem>>, %arg20: memref<32x32xf32, #tpu.memory_space<vmem>>, %arg21: memref<32x32xf32, #tpu.memory_space<vmem>>, %arg22: memref<32x32xf32, #tpu.memory_space<vmem>>, %arg23: memref<1x32xf32, #tpu.memory_space<vmem>>, %arg24: memref<32x32xf32, #tpu.memory_space<vmem>>, %arg25: memref<32x32xf32, #tpu.memory_space<vmem>>, %arg26: memref<1x32xf32, #tpu.memory_space<vmem>>, %arg27: memref<32x32xf32, #tpu.memory_space<vmem>>, %arg28: memref<1x32xf32, #tpu.memory_space<vmem>>, %arg29: memref<32x128xf32, #tpu.memory_space<vmem>>, %arg30: memref<1x128xf32, #tpu.memory_space<vmem>>, %arg31: memref<32x128xf32, #tpu.memory_space<vmem>>) attributes {dimension_semantics = [#tpu.dimension_semantics<parallel>], iteration_bounds = array<i64: 2>, scalar_prefetch = 0 : i64, scratch_operands = 0 : i64, tpu.core_type = #tpu.core_type<tc>, window_params = [{transform_indices = @transform_0, window_bounds = array<i64: 32, 9>}, {transform_indices = @transform_1, window_bounds = array<i64: 2, 16, 32>}, {transform_indices = @transform_2, window_bounds = array<i64: 2, 32, 16>}, {transform_indices = @transform_3, window_bounds = array<i64: 2, 32, 16>}, {transform_indices = @transform_4, window_bounds = array<i64: 64, 3>}, {pipeline_mode = #tpu.pipeline_mode<synchronous>, transform_indices = @transform_5, window_bounds = array<i64: 9, 32>}, {pipeline_mode = #tpu.pipeline_mode<synchronous>, transform_indices = @transform_6, window_bounds = array<i64: 1, 32>}, {pipeline_mode = #tpu.pipeline_mode<synchronous>, transform_indices = @transform_7, window_bounds = array<i64: 32, 32>}, {pipeline_mode = #tpu.pipeline_mode<synchronous>, transform_indices = @transform_8, window_bounds = array<i64: 1, 32>}, {pipeline_mode = #tpu.pipeline_mode<synchronous>, transform_indices = @transform_9, window_bounds = array<i64: 32, 32>}, {pipeline_mode = #tpu.pipeline_mode<synchronous>, transform_indices = @transform_10, window_bounds = array<i64: 1, 32>}, {pipeline_mode = #tpu.pipeline_mode<synchronous>, transform_indices = @transform_11, window_bounds = array<i64: 9, 32>}, {pipeline_mode = #tpu.pipeline_mode<synchronous>, transform_indices = @transform_12, window_bounds = array<i64: 9, 32>}, {pipeline_mode = #tpu.pipeline_mode<synchronous>, transform_indices = @transform_13, window_bounds = array<i64: 3, 32>}, {pipeline_mode = #tpu.pipeline_mode<synchronous>, transform_indices = @transform_14, window_bounds = array<i64: 1, 32>}, {pipeline_mode = #tpu.pipeline_mode<synchronous>, transform_indices = @transform_15, window_bounds = array<i64: 32, 32>}, {pipeline_mode = #tpu.pipeline_mode<synchronous>, transform_indices = @transform_16, window_bounds = array<i64: 1, 32>}, {pipeline_mode = #tpu.pipeline_mode<synchronous>, transform_indices = @transform_17, window_bounds = array<i64: 32, 32>}, {pipeline_mode = #tpu.pipeline_mode<synchronous>, transform_indices = @transform_18, window_bounds = array<i64: 1, 32>}, {pipeline_mode = #tpu.pipeline_mode<synchronous>, transform_indices = @transform_19, window_bounds = array<i64: 32, 32>}, {pipeline_mode = #tpu.pipeline_mode<synchronous>, transform_indices = @transform_20, window_bounds = array<i64: 32, 32>}, {pipeline_mode = #tpu.pipeline_mode<synchronous>, transform_indices = @transform_21, window_bounds = array<i64: 32, 32>}, {pipeline_mode = #tpu.pipeline_mode<synchronous>, transform_indices = @transform_22, window_bounds = array<i64: 1, 32>}, {pipeline_mode = #tpu.pipeline_mode<synchronous>, transform_indices = @transform_23, window_bounds = array<i64: 32, 32>}, {pipeline_mode = #tpu.pipeline_mode<synchronous>, transform_indices = @transform_24, window_bounds = array<i64: 32, 32>}, {pipeline_mode = #tpu.pipeline_mode<synchronous>, transform_indices = @transform_25, window_bounds = array<i64: 1, 32>}, {pipeline_mode = #tpu.pipeline_mode<synchronous>, transform_indices = @transform_26, window_bounds = array<i64: 32, 32>}, {pipeline_mode = #tpu.pipeline_mode<synchronous>, transform_indices = @transform_27, window_bounds = array<i64: 1, 32>}, {pipeline_mode = #tpu.pipeline_mode<synchronous>, transform_indices = @transform_28, window_bounds = array<i64: 32, 128>}, {pipeline_mode = #tpu.pipeline_mode<synchronous>, transform_indices = @transform_29, window_bounds = array<i64: 1, 128>}, {transform_indices = @transform_30, window_bounds = array<i64: 32, 128>}]} {
    %c0 = arith.constant 0 : index
    %c0_0 = arith.constant 0 : index
    %0 = vector.load %arg1[%c0, %c0_0] : memref<32x9xf32, #tpu.memory_space<vmem>>, vector<32x9xf32>
    %c0_1 = arith.constant 0 : index
    %c0_2 = arith.constant 0 : index
    %1 = vector.load %arg6[%c0_1, %c0_2] : memref<9x32xf32, #tpu.memory_space<vmem>>, vector<9x32xf32>
    %cst = arith.constant dense<0.000000e+00> : vector<32x32xf32>
    %2 = tpu.matmul %0, %1, %cst {dimension_numbers = #tpu.dot_dimension_numbers<[1], [0], [0], [1], [0, 0, 1, 1], [], []>} : vector<32x9xf32>, vector<9x32xf32>, vector<32x32xf32> -> vector<32x32xf32>
    %c0_3 = arith.constant 0 : index
    %c0_4 = arith.constant 0 : index
    %3 = vector.load %arg7[%c0_3, %c0_4] : memref<1x32xf32, #tpu.memory_space<vmem>>, vector<1x32xf32>
    %4 = vector.broadcast %3 : vector<1x32xf32> to vector<32x32xf32>
    %5 = arith.addf %2, %4 : vector<32x32xf32>
    %cst_5 = arith.constant 0.000000e+00 : f32
    %6 = vector.broadcast %cst_5 : f32 to vector<32x32xf32>
    %7 = arith.maximumf %5, %6 : vector<32x32xf32>
    %c0_6 = arith.constant 0 : index
    %c0_7 = arith.constant 0 : index
    %8 = vector.load %arg8[%c0_6, %c0_7] : memref<32x32xf32, #tpu.memory_space<vmem>>, vector<32x32xf32>
    %cst_8 = arith.constant dense<0.000000e+00> : vector<32x32xf32>
    %9 = tpu.matmul %7, %8, %cst_8 {dimension_numbers = #tpu.dot_dimension_numbers<[1], [0], [0], [1], [0, 0, 1, 1], [], []>} : vector<32x32xf32>, vector<32x32xf32>, vector<32x32xf32> -> vector<32x32xf32>
    %c0_9 = arith.constant 0 : index
    %c0_10 = arith.constant 0 : index
    %10 = vector.load %arg9[%c0_9, %c0_10] : memref<1x32xf32, #tpu.memory_space<vmem>>, vector<1x32xf32>
    %11 = vector.broadcast %10 : vector<1x32xf32> to vector<32x32xf32>
    %12 = arith.addf %9, %11 : vector<32x32xf32>
    %cst_11 = arith.constant 0.000000e+00 : f32
    %13 = vector.broadcast %cst_11 : f32 to vector<32x32xf32>
    %14 = arith.maximumf %12, %13 : vector<32x32xf32>
    %c0_12 = arith.constant 0 : index
    %c0_13 = arith.constant 0 : index
    %15 = vector.load %arg10[%c0_12, %c0_13] : memref<32x32xf32, #tpu.memory_space<vmem>>, vector<32x32xf32>
    %cst_14 = arith.constant dense<0.000000e+00> : vector<32x32xf32>
    %16 = tpu.matmul %14, %15, %cst_14 {dimension_numbers = #tpu.dot_dimension_numbers<[1], [0], [0], [1], [0, 0, 1, 1], [], []>} : vector<32x32xf32>, vector<32x32xf32>, vector<32x32xf32> -> vector<32x32xf32>
    %c0_15 = arith.constant 0 : index
    %c0_16 = arith.constant 0 : index
    %17 = vector.load %arg11[%c0_15, %c0_16] : memref<1x32xf32, #tpu.memory_space<vmem>>, vector<1x32xf32>
    %18 = vector.broadcast %17 : vector<1x32xf32> to vector<32x32xf32>
    %19 = arith.addf %16, %18 : vector<32x32xf32>
    %cst_17 = arith.constant 0.000000e+00 : f32
    %20 = vector.broadcast %cst_17 : f32 to vector<32x32xf32>
    %21 = arith.maximumf %19, %20 : vector<32x32xf32>
    %c0_18 = arith.constant 0 : index
    %c0_19 = arith.constant 0 : index
    %c0_20 = arith.constant 0 : index
    %22 = vector.load %arg3[%c0_18, %c0_19, %c0_20] : memref<2x32x16xf32, #tpu.memory_space<vmem>>, vector<1x32x16xf32>
    %23 = vector.shape_cast %22 : vector<1x32x16xf32> to vector<32x16xf32>
    %24 = vector.extract_strided_slice %0 {offsets = [0, 0], sizes = [16, 9], strides = [1, 1]} : vector<32x9xf32> to vector<16x9xf32>
    %cst_21 = arith.constant dense<0.000000e+00> : vector<32x9xf32>
    %25 = tpu.matmul %23, %24, %cst_21 {dimension_numbers = #tpu.dot_dimension_numbers<[1], [0], [0], [1], [0, 0, 1, 1], [], []>} : vector<32x16xf32>, vector<16x9xf32>, vector<32x9xf32> -> vector<32x9xf32>
    %c1 = arith.constant 1 : index
    %c0_22 = arith.constant 0 : index
    %c0_23 = arith.constant 0 : index
    %26 = vector.load %arg3[%c1, %c0_22, %c0_23] : memref<2x32x16xf32, #tpu.memory_space<vmem>>, vector<1x32x16xf32>
    %27 = vector.shape_cast %26 : vector<1x32x16xf32> to vector<32x16xf32>
    %28 = vector.extract_strided_slice %0 {offsets = [16, 0], sizes = [16, 9], strides = [1, 1]} : vector<32x9xf32> to vector<16x9xf32>
    %cst_24 = arith.constant dense<0.000000e+00> : vector<32x9xf32>
    %29 = tpu.matmul %27, %28, %cst_24 {dimension_numbers = #tpu.dot_dimension_numbers<[1], [0], [0], [1], [0, 0, 1, 1], [], []>} : vector<32x16xf32>, vector<16x9xf32>, vector<32x9xf32> -> vector<32x9xf32>
    %30 = tpu.concatenate %25, %29 in 0 : vector<32x9xf32>, vector<32x9xf32> -> vector<64x9xf32>
    %c0_25 = arith.constant 0 : index
    %c0_26 = arith.constant 0 : index
    %c0_27 = arith.constant 0 : index
    %31 = vector.load %arg4[%c0_25, %c0_26, %c0_27] : memref<2x32x16xf32, #tpu.memory_space<vmem>>, vector<1x32x16xf32>
    %32 = vector.shape_cast %31 : vector<1x32x16xf32> to vector<32x16xf32>
    %33 = vector.extract_strided_slice %0 {offsets = [0, 0], sizes = [16, 9], strides = [1, 1]} : vector<32x9xf32> to vector<16x9xf32>
    %cst_28 = arith.constant dense<0.000000e+00> : vector<32x9xf32>
    %34 = tpu.matmul %32, %33, %cst_28 {dimension_numbers = #tpu.dot_dimension_numbers<[1], [0], [0], [1], [0, 0, 1, 1], [], []>} : vector<32x16xf32>, vector<16x9xf32>, vector<32x9xf32> -> vector<32x9xf32>
    %c1_29 = arith.constant 1 : index
    %c0_30 = arith.constant 0 : index
    %c0_31 = arith.constant 0 : index
    %35 = vector.load %arg4[%c1_29, %c0_30, %c0_31] : memref<2x32x16xf32, #tpu.memory_space<vmem>>, vector<1x32x16xf32>
    %36 = vector.shape_cast %35 : vector<1x32x16xf32> to vector<32x16xf32>
    %37 = vector.extract_strided_slice %0 {offsets = [16, 0], sizes = [16, 9], strides = [1, 1]} : vector<32x9xf32> to vector<16x9xf32>
    %cst_32 = arith.constant dense<0.000000e+00> : vector<32x9xf32>
    %38 = tpu.matmul %36, %37, %cst_32 {dimension_numbers = #tpu.dot_dimension_numbers<[1], [0], [0], [1], [0, 0, 1, 1], [], []>} : vector<32x16xf32>, vector<16x9xf32>, vector<32x9xf32> -> vector<32x9xf32>
    %39 = tpu.concatenate %34, %38 in 0 : vector<32x9xf32>, vector<32x9xf32> -> vector<64x9xf32>
    %c0_33 = arith.constant 0 : index
    %c0_34 = arith.constant 0 : index
    %40 = vector.load %arg12[%c0_33, %c0_34] : memref<9x32xf32, #tpu.memory_space<vmem>>, vector<9x32xf32>
    %cst_35 = arith.constant dense<0.000000e+00> : vector<64x32xf32>
    %41 = tpu.matmul %30, %40, %cst_35 {dimension_numbers = #tpu.dot_dimension_numbers<[1], [0], [0], [1], [0, 0, 1, 1], [], []>} : vector<64x9xf32>, vector<9x32xf32>, vector<64x32xf32> -> vector<64x32xf32>
    %c0_36 = arith.constant 0 : index
    %c0_37 = arith.constant 0 : index
    %42 = vector.load %arg13[%c0_36, %c0_37] : memref<9x32xf32, #tpu.memory_space<vmem>>, vector<9x32xf32>
    %cst_38 = arith.constant dense<0.000000e+00> : vector<64x32xf32>
    %43 = tpu.matmul %39, %42, %cst_38 {dimension_numbers = #tpu.dot_dimension_numbers<[1], [0], [0], [1], [0, 0, 1, 1], [], []>} : vector<64x9xf32>, vector<9x32xf32>, vector<64x32xf32> -> vector<64x32xf32>
    %44 = arith.addf %41, %43 : vector<64x32xf32>
    %c0_39 = arith.constant 0 : index
    %c0_40 = arith.constant 0 : index
    %45 = vector.load %arg5[%c0_39, %c0_40] : memref<64x3xf32, #tpu.memory_space<vmem>>, vector<64x3xf32>
    %c0_41 = arith.constant 0 : index
    %c0_42 = arith.constant 0 : index
    %46 = vector.load %arg14[%c0_41, %c0_42] : memref<3x32xf32, #tpu.memory_space<vmem>>, vector<3x32xf32>
    %cst_43 = arith.constant dense<0.000000e+00> : vector<64x32xf32>
    %47 = tpu.matmul %45, %46, %cst_43 {dimension_numbers = #tpu.dot_dimension_numbers<[1], [0], [0], [1], [0, 0, 1, 1], [], []>} : vector<64x3xf32>, vector<3x32xf32>, vector<64x32xf32> -> vector<64x32xf32>
    %48 = arith.addf %44, %47 : vector<64x32xf32>
    %c0_44 = arith.constant 0 : index
    %c0_45 = arith.constant 0 : index
    %49 = vector.load %arg15[%c0_44, %c0_45] : memref<1x32xf32, #tpu.memory_space<vmem>>, vector<1x32xf32>
    %50 = vector.broadcast %49 : vector<1x32xf32> to vector<64x32xf32>
    %51 = arith.addf %48, %50 : vector<64x32xf32>
    %cst_46 = arith.constant 0.000000e+00 : f32
    %52 = vector.broadcast %cst_46 : f32 to vector<64x32xf32>
    %53 = arith.maximumf %51, %52 : vector<64x32xf32>
    %c0_47 = arith.constant 0 : index
    %c0_48 = arith.constant 0 : index
    %54 = vector.load %arg16[%c0_47, %c0_48] : memref<32x32xf32, #tpu.memory_space<vmem>>, vector<32x32xf32>
    %cst_49 = arith.constant dense<0.000000e+00> : vector<64x32xf32>
    %55 = tpu.matmul %53, %54, %cst_49 {dimension_numbers = #tpu.dot_dimension_numbers<[1], [0], [0], [1], [0, 0, 1, 1], [], []>} : vector<64x32xf32>, vector<32x32xf32>, vector<64x32xf32> -> vector<64x32xf32>
    %c0_50 = arith.constant 0 : index
    %c0_51 = arith.constant 0 : index
    %56 = vector.load %arg17[%c0_50, %c0_51] : memref<1x32xf32, #tpu.memory_space<vmem>>, vector<1x32xf32>
    %57 = vector.broadcast %56 : vector<1x32xf32> to vector<64x32xf32>
    %58 = arith.addf %55, %57 : vector<64x32xf32>
    %cst_52 = arith.constant 0.000000e+00 : f32
    %59 = vector.broadcast %cst_52 : f32 to vector<64x32xf32>
    %60 = arith.maximumf %58, %59 : vector<64x32xf32>
    %c0_53 = arith.constant 0 : index
    %c0_54 = arith.constant 0 : index
    %61 = vector.load %arg18[%c0_53, %c0_54] : memref<32x32xf32, #tpu.memory_space<vmem>>, vector<32x32xf32>
    %cst_55 = arith.constant dense<0.000000e+00> : vector<64x32xf32>
    %62 = tpu.matmul %60, %61, %cst_55 {dimension_numbers = #tpu.dot_dimension_numbers<[1], [0], [0], [1], [0, 0, 1, 1], [], []>} : vector<64x32xf32>, vector<32x32xf32>, vector<64x32xf32> -> vector<64x32xf32>
    %c0_56 = arith.constant 0 : index
    %c0_57 = arith.constant 0 : index
    %63 = vector.load %arg19[%c0_56, %c0_57] : memref<1x32xf32, #tpu.memory_space<vmem>>, vector<1x32xf32>
    %64 = vector.broadcast %63 : vector<1x32xf32> to vector<64x32xf32>
    %65 = arith.addf %62, %64 : vector<64x32xf32>
    %cst_58 = arith.constant 0.000000e+00 : f32
    %66 = vector.broadcast %cst_58 : f32 to vector<64x32xf32>
    %67 = arith.maximumf %65, %66 : vector<64x32xf32>
    %c0_59 = arith.constant 0 : index
    %c0_60 = arith.constant 0 : index
    %68 = vector.load %arg20[%c0_59, %c0_60] : memref<32x32xf32, #tpu.memory_space<vmem>>, vector<32x32xf32>
    %cst_61 = arith.constant dense<0.000000e+00> : vector<64x32xf32>
    %69 = tpu.matmul %67, %68, %cst_61 {dimension_numbers = #tpu.dot_dimension_numbers<[1], [0], [0], [1], [0, 0, 1, 1], [], []>} : vector<64x32xf32>, vector<32x32xf32>, vector<64x32xf32> -> vector<64x32xf32>
    %c0_62 = arith.constant 0 : index
    %c0_63 = arith.constant 0 : index
    %70 = vector.load %arg23[%c0_62, %c0_63] : memref<1x32xf32, #tpu.memory_space<vmem>>, vector<1x32xf32>
    %71 = vector.broadcast %70 : vector<1x32xf32> to vector<64x32xf32>
    %72 = arith.addf %69, %71 : vector<64x32xf32>
    %c0_64 = arith.constant 0 : index
    %c0_65 = arith.constant 0 : index
    %73 = vector.load %arg24[%c0_64, %c0_65] : memref<32x32xf32, #tpu.memory_space<vmem>>, vector<32x32xf32>
    %cst_66 = arith.constant dense<0.000000e+00> : vector<32x32xf32>
    %74 = tpu.matmul %21, %73, %cst_66 {dimension_numbers = #tpu.dot_dimension_numbers<[1], [0], [0], [1], [0, 0, 1, 1], [], []>} : vector<32x32xf32>, vector<32x32xf32>, vector<32x32xf32> -> vector<32x32xf32>
    %c0_67 = arith.constant 0 : index
    %c0_68 = arith.constant 0 : index
    %75 = vector.load %arg26[%c0_67, %c0_68] : memref<1x32xf32, #tpu.memory_space<vmem>>, vector<1x32xf32>
    %76 = vector.broadcast %75 : vector<1x32xf32> to vector<32x32xf32>
    %77 = arith.addf %74, %76 : vector<32x32xf32>
    %cst_69 = arith.constant 0.000000e+00 : f32
    %78 = vector.broadcast %cst_69 : f32 to vector<64x32xf32>
    %79 = arith.maximumf %72, %78 : vector<64x32xf32>
    %c0_70 = arith.constant 0 : index
    %c0_71 = arith.constant 0 : index
    %c0_72 = arith.constant 0 : index
    %80 = vector.load %arg2[%c0_70, %c0_71, %c0_72] : memref<2x16x32xf32, #tpu.memory_space<vmem>>, vector<1x16x32xf32>
    %81 = vector.shape_cast %80 : vector<1x16x32xf32> to vector<16x32xf32>
    %82 = vector.extract_strided_slice %79 {offsets = [0, 0], sizes = [32, 32], strides = [1, 1]} : vector<64x32xf32> to vector<32x32xf32>
    %cst_73 = arith.constant dense<0.000000e+00> : vector<16x32xf32>
    %83 = tpu.matmul %81, %82, %cst_73 {dimension_numbers = #tpu.dot_dimension_numbers<[1], [0], [0], [1], [0, 0, 1, 1], [], []>} : vector<16x32xf32>, vector<32x32xf32>, vector<16x32xf32> -> vector<16x32xf32>
    %c1_74 = arith.constant 1 : index
    %c0_75 = arith.constant 0 : index
    %c0_76 = arith.constant 0 : index
    %84 = vector.load %arg2[%c1_74, %c0_75, %c0_76] : memref<2x16x32xf32, #tpu.memory_space<vmem>>, vector<1x16x32xf32>
    %85 = vector.shape_cast %84 : vector<1x16x32xf32> to vector<16x32xf32>
    %86 = vector.extract_strided_slice %79 {offsets = [32, 0], sizes = [32, 32], strides = [1, 1]} : vector<64x32xf32> to vector<32x32xf32>
    %cst_77 = arith.constant dense<0.000000e+00> : vector<16x32xf32>
    %87 = tpu.matmul %85, %86, %cst_77 {dimension_numbers = #tpu.dot_dimension_numbers<[1], [0], [0], [1], [0, 0, 1, 1], [], []>} : vector<16x32xf32>, vector<32x32xf32>, vector<16x32xf32> -> vector<16x32xf32>
    %88 = tpu.concatenate %83, %87 in 0 : vector<16x32xf32>, vector<16x32xf32> -> vector<32x32xf32>
    %c0_78 = arith.constant 0 : index
    %c0_79 = arith.constant 0 : index
    %89 = vector.load %arg25[%c0_78, %c0_79] : memref<32x32xf32, #tpu.memory_space<vmem>>, vector<32x32xf32>
    %cst_80 = arith.constant dense<0.000000e+00> : vector<32x32xf32>
    %90 = tpu.matmul %88, %89, %cst_80 {dimension_numbers = #tpu.dot_dimension_numbers<[1], [0], [0], [1], [0, 0, 1, 1], [], []>} : vector<32x32xf32>, vector<32x32xf32>, vector<32x32xf32> -> vector<32x32xf32>
    %91 = arith.addf %77, %90 : vector<32x32xf32>
    %cst_81 = arith.constant 0.000000e+00 : f32
    %92 = vector.broadcast %cst_81 : f32 to vector<32x32xf32>
    %93 = arith.maximumf %91, %92 : vector<32x32xf32>
    %c0_82 = arith.constant 0 : index
    %c0_83 = arith.constant 0 : index
    %c0_84 = arith.constant 0 : index
    %94 = vector.load %arg3[%c0_82, %c0_83, %c0_84] : memref<2x32x16xf32, #tpu.memory_space<vmem>>, vector<1x32x16xf32>
    %95 = vector.shape_cast %94 : vector<1x32x16xf32> to vector<32x16xf32>
    %96 = vector.extract_strided_slice %93 {offsets = [0, 0], sizes = [16, 32], strides = [1, 1]} : vector<32x32xf32> to vector<16x32xf32>
    %cst_85 = arith.constant dense<0.000000e+00> : vector<32x32xf32>
    %97 = tpu.matmul %95, %96, %cst_85 {dimension_numbers = #tpu.dot_dimension_numbers<[1], [0], [0], [1], [0, 0, 1, 1], [], []>} : vector<32x16xf32>, vector<16x32xf32>, vector<32x32xf32> -> vector<32x32xf32>
    %c1_86 = arith.constant 1 : index
    %c0_87 = arith.constant 0 : index
    %c0_88 = arith.constant 0 : index
    %98 = vector.load %arg3[%c1_86, %c0_87, %c0_88] : memref<2x32x16xf32, #tpu.memory_space<vmem>>, vector<1x32x16xf32>
    %99 = vector.shape_cast %98 : vector<1x32x16xf32> to vector<32x16xf32>
    %100 = vector.extract_strided_slice %93 {offsets = [16, 0], sizes = [16, 32], strides = [1, 1]} : vector<32x32xf32> to vector<16x32xf32>
    %cst_89 = arith.constant dense<0.000000e+00> : vector<32x32xf32>
    %101 = tpu.matmul %99, %100, %cst_89 {dimension_numbers = #tpu.dot_dimension_numbers<[1], [0], [0], [1], [0, 0, 1, 1], [], []>} : vector<32x16xf32>, vector<16x32xf32>, vector<32x32xf32> -> vector<32x32xf32>
    %102 = tpu.concatenate %97, %101 in 0 : vector<32x32xf32>, vector<32x32xf32> -> vector<64x32xf32>
    %c0_90 = arith.constant 0 : index
    %c0_91 = arith.constant 0 : index
    %c0_92 = arith.constant 0 : index
    %103 = vector.load %arg4[%c0_90, %c0_91, %c0_92] : memref<2x32x16xf32, #tpu.memory_space<vmem>>, vector<1x32x16xf32>
    %104 = vector.shape_cast %103 : vector<1x32x16xf32> to vector<32x16xf32>
    %105 = vector.extract_strided_slice %93 {offsets = [0, 0], sizes = [16, 32], strides = [1, 1]} : vector<32x32xf32> to vector<16x32xf32>
    %cst_93 = arith.constant dense<0.000000e+00> : vector<32x32xf32>
    %106 = tpu.matmul %104, %105, %cst_93 {dimension_numbers = #tpu.dot_dimension_numbers<[1], [0], [0], [1], [0, 0, 1, 1], [], []>} : vector<32x16xf32>, vector<16x32xf32>, vector<32x32xf32> -> vector<32x32xf32>
    %c1_94 = arith.constant 1 : index
    %c0_95 = arith.constant 0 : index
    %c0_96 = arith.constant 0 : index
    %107 = vector.load %arg4[%c1_94, %c0_95, %c0_96] : memref<2x32x16xf32, #tpu.memory_space<vmem>>, vector<1x32x16xf32>
    %108 = vector.shape_cast %107 : vector<1x32x16xf32> to vector<32x16xf32>
    %109 = vector.extract_strided_slice %93 {offsets = [16, 0], sizes = [16, 32], strides = [1, 1]} : vector<32x32xf32> to vector<16x32xf32>
    %cst_97 = arith.constant dense<0.000000e+00> : vector<32x32xf32>
    %110 = tpu.matmul %108, %109, %cst_97 {dimension_numbers = #tpu.dot_dimension_numbers<[1], [0], [0], [1], [0, 0, 1, 1], [], []>} : vector<32x16xf32>, vector<16x32xf32>, vector<32x32xf32> -> vector<32x32xf32>
    %111 = tpu.concatenate %106, %110 in 0 : vector<32x32xf32>, vector<32x32xf32> -> vector<64x32xf32>
    %c0_98 = arith.constant 0 : index
    %c0_99 = arith.constant 0 : index
    %112 = vector.load %arg21[%c0_98, %c0_99] : memref<32x32xf32, #tpu.memory_space<vmem>>, vector<32x32xf32>
    %cst_100 = arith.constant dense<0.000000e+00> : vector<64x32xf32>
    %113 = tpu.matmul %102, %112, %cst_100 {dimension_numbers = #tpu.dot_dimension_numbers<[1], [0], [0], [1], [0, 0, 1, 1], [], []>} : vector<64x32xf32>, vector<32x32xf32>, vector<64x32xf32> -> vector<64x32xf32>
    %114 = arith.addf %72, %113 : vector<64x32xf32>
    %c0_101 = arith.constant 0 : index
    %c0_102 = arith.constant 0 : index
    %115 = vector.load %arg22[%c0_101, %c0_102] : memref<32x32xf32, #tpu.memory_space<vmem>>, vector<32x32xf32>
    %cst_103 = arith.constant dense<0.000000e+00> : vector<64x32xf32>
    %116 = tpu.matmul %111, %115, %cst_103 {dimension_numbers = #tpu.dot_dimension_numbers<[1], [0], [0], [1], [0, 0, 1, 1], [], []>} : vector<64x32xf32>, vector<32x32xf32>, vector<64x32xf32> -> vector<64x32xf32>
    %117 = arith.addf %114, %116 : vector<64x32xf32>
    %cst_104 = arith.constant 0.000000e+00 : f32
    %118 = vector.broadcast %cst_104 : f32 to vector<64x32xf32>
    %119 = arith.maximumf %117, %118 : vector<64x32xf32>
    %c0_105 = arith.constant 0 : index
    %c0_106 = arith.constant 0 : index
    %c0_107 = arith.constant 0 : index
    %120 = vector.load %arg2[%c0_105, %c0_106, %c0_107] : memref<2x16x32xf32, #tpu.memory_space<vmem>>, vector<1x16x32xf32>
    %121 = vector.shape_cast %120 : vector<1x16x32xf32> to vector<16x32xf32>
    %122 = vector.extract_strided_slice %119 {offsets = [0, 0], sizes = [32, 32], strides = [1, 1]} : vector<64x32xf32> to vector<32x32xf32>
    %cst_108 = arith.constant dense<0.000000e+00> : vector<16x32xf32>
    %123 = tpu.matmul %121, %122, %cst_108 {dimension_numbers = #tpu.dot_dimension_numbers<[1], [0], [0], [1], [0, 0, 1, 1], [], []>} : vector<16x32xf32>, vector<32x32xf32>, vector<16x32xf32> -> vector<16x32xf32>
    %c1_109 = arith.constant 1 : index
    %c0_110 = arith.constant 0 : index
    %c0_111 = arith.constant 0 : index
    %124 = vector.load %arg2[%c1_109, %c0_110, %c0_111] : memref<2x16x32xf32, #tpu.memory_space<vmem>>, vector<1x16x32xf32>
    %125 = vector.shape_cast %124 : vector<1x16x32xf32> to vector<16x32xf32>
    %126 = vector.extract_strided_slice %119 {offsets = [32, 0], sizes = [32, 32], strides = [1, 1]} : vector<64x32xf32> to vector<32x32xf32>
    %cst_112 = arith.constant dense<0.000000e+00> : vector<16x32xf32>
    %127 = tpu.matmul %125, %126, %cst_112 {dimension_numbers = #tpu.dot_dimension_numbers<[1], [0], [0], [1], [0, 0, 1, 1], [], []>} : vector<16x32xf32>, vector<32x32xf32>, vector<16x32xf32> -> vector<16x32xf32>
    %128 = tpu.concatenate %123, %127 in 0 : vector<16x32xf32>, vector<16x32xf32> -> vector<32x32xf32>
    %c0_113 = arith.constant 0 : index
    %c0_114 = arith.constant 0 : index
    %129 = vector.load %arg25[%c0_113, %c0_114] : memref<32x32xf32, #tpu.memory_space<vmem>>, vector<32x32xf32>
    %cst_115 = arith.constant dense<0.000000e+00> : vector<32x32xf32>
    %130 = tpu.matmul %128, %129, %cst_115 {dimension_numbers = #tpu.dot_dimension_numbers<[1], [0], [0], [1], [0, 0, 1, 1], [], []>} : vector<32x32xf32>, vector<32x32xf32>, vector<32x32xf32> -> vector<32x32xf32>
    %131 = arith.addf %77, %130 : vector<32x32xf32>
    %cst_116 = arith.constant 0.000000e+00 : f32
    %132 = vector.broadcast %cst_116 : f32 to vector<32x32xf32>
    %133 = arith.maximumf %131, %132 : vector<32x32xf32>
    %c0_117 = arith.constant 0 : index
    %c0_118 = arith.constant 0 : index
    %134 = vector.load %arg27[%c0_117, %c0_118] : memref<32x32xf32, #tpu.memory_space<vmem>>, vector<32x32xf32>
    %cst_119 = arith.constant dense<0.000000e+00> : vector<32x32xf32>
    %135 = tpu.matmul %133, %134, %cst_119 {dimension_numbers = #tpu.dot_dimension_numbers<[1], [0], [0], [1], [0, 0, 1, 1], [], []>} : vector<32x32xf32>, vector<32x32xf32>, vector<32x32xf32> -> vector<32x32xf32>
    %c0_120 = arith.constant 0 : index
    %c0_121 = arith.constant 0 : index
    %136 = vector.load %arg28[%c0_120, %c0_121] : memref<1x32xf32, #tpu.memory_space<vmem>>, vector<1x32xf32>
    %137 = vector.broadcast %136 : vector<1x32xf32> to vector<32x32xf32>
    %138 = arith.addf %135, %137 : vector<32x32xf32>
    %cst_122 = arith.constant 0.000000e+00 : f32
    %139 = vector.broadcast %cst_122 : f32 to vector<32x32xf32>
    %140 = arith.maximumf %138, %139 : vector<32x32xf32>
    %c0_123 = arith.constant 0 : index
    %c0_124 = arith.constant 0 : index
    %141 = vector.load %arg29[%c0_123, %c0_124] : memref<32x128xf32, #tpu.memory_space<vmem>>, vector<32x128xf32>
    %cst_125 = arith.constant dense<0.000000e+00> : vector<32x128xf32>
    %142 = tpu.matmul %140, %141, %cst_125 {dimension_numbers = #tpu.dot_dimension_numbers<[1], [0], [0], [1], [0, 0, 1, 1], [], []>} : vector<32x32xf32>, vector<32x128xf32>, vector<32x128xf32> -> vector<32x128xf32>
    %c0_126 = arith.constant 0 : index
    %c0_127 = arith.constant 0 : index
    %143 = vector.load %arg30[%c0_126, %c0_127] : memref<1x128xf32, #tpu.memory_space<vmem>>, vector<1x128xf32>
    %144 = vector.broadcast %143 : vector<1x128xf32> to vector<32x128xf32>
    %145 = arith.addf %142, %144 : vector<32x128xf32>
    %c0_128 = arith.constant 0 : index
    %c0_129 = arith.constant 0 : index
    %146 = vector.load %arg31[%c0_128, %c0_129] : memref<32x128xf32, #tpu.memory_space<vmem>>, vector<32x128xf32>
    tpu.vector_store %arg31[%c0_128, %c0_129], %145 {strides = array<i32>} : memref<32x128xf32, #tpu.memory_space<vmem>>, vector<32x128xf32>,
    return
  }
  func.func @transform_0(%arg0: i32) -> (i32, i32) {
    %c0_i32 = arith.constant 0 : i32
    %c0_i32_0 = arith.constant 0 : i32
    return %arg0, %c0_i32 : i32, i32
  }
  func.func @transform_1(%arg0: i32) -> (i32, i32, i32) {
    %c0_i32 = arith.constant 0 : i32
    %c0_i32_0 = arith.constant 0 : i32
    %c0_i32_1 = arith.constant 0 : i32
    return %arg0, %c0_i32, %c0_i32_0 : i32, i32, i32
  }
  func.func @transform_2(%arg0: i32) -> (i32, i32, i32) {
    %c0_i32 = arith.constant 0 : i32
    %c0_i32_0 = arith.constant 0 : i32
    %c0_i32_1 = arith.constant 0 : i32
    return %arg0, %c0_i32, %c0_i32_0 : i32, i32, i32
  }
  func.func @transform_3(%arg0: i32) -> (i32, i32, i32) {
    %c0_i32 = arith.constant 0 : i32
    %c0_i32_0 = arith.constant 0 : i32
    %c0_i32_1 = arith.constant 0 : i32
    return %arg0, %c0_i32, %c0_i32_0 : i32, i32, i32
  }
  func.func @transform_4(%arg0: i32) -> (i32, i32) {
    %c0_i32 = arith.constant 0 : i32
    %c0_i32_0 = arith.constant 0 : i32
    return %arg0, %c0_i32 : i32, i32
  }
  func.func @transform_5(%arg0: i32) -> (i32, i32) {
    %c0_i32 = arith.constant 0 : i32
    %c0_i32_0 = arith.constant 0 : i32
    %c0_i32_1 = arith.constant 0 : i32
    return %c0_i32, %c0_i32_0 : i32, i32
  }
  func.func @transform_6(%arg0: i32) -> (i32, i32) {
    %c0_i32 = arith.constant 0 : i32
    %c0_i32_0 = arith.constant 0 : i32
    %c0_i32_1 = arith.constant 0 : i32
    return %c0_i32, %c0_i32_0 : i32, i32
  }
  func.func @transform_7(%arg0: i32) -> (i32, i32) {
    %c0_i32 = arith.constant 0 : i32
    %c0_i32_0 = arith.constant 0 : i32
    %c0_i32_1 = arith.constant 0 : i32
    return %c0_i32, %c0_i32_0 : i32, i32
  }
  func.func @transform_8(%arg0: i32) -> (i32, i32) {
    %c0_i32 = arith.constant 0 : i32
    %c0_i32_0 = arith.constant 0 : i32
    %c0_i32_1 = arith.constant 0 : i32
    return %c0_i32, %c0_i32_0 : i32, i32
  }
  func.func @transform_9(%arg0: i32) -> (i32, i32) {
    %c0_i32 = arith.constant 0 : i32
    %c0_i32_0 = arith.constant 0 : i32
    %c0_i32_1 = arith.constant 0 : i32
    return %c0_i32, %c0_i32_0 : i32, i32
  }
  func.func @transform_10(%arg0: i32) -> (i32, i32) {
    %c0_i32 = arith.constant 0 : i32
    %c0_i32_0 = arith.constant 0 : i32
    %c0_i32_1 = arith.constant 0 : i32
    return %c0_i32, %c0_i32_0 : i32, i32
  }
  func.func @transform_11(%arg0: i32) -> (i32, i32) {
    %c0_i32 = arith.constant 0 : i32
    %c0_i32_0 = arith.constant 0 : i32
    %c0_i32_1 = arith.constant 0 : i32
    return %c0_i32, %c0_i32_0 : i32, i32
  }
  func.func @transform_12(%arg0: i32) -> (i32, i32) {
    %c0_i32 = arith.constant 0 : i32
    %c0_i32_0 = arith.constant 0 : i32
    %c0_i32_1 = arith.constant 0 : i32
    return %c0_i32, %c0_i32_0 : i32, i32
  }
  func.func @transform_13(%arg0: i32) -> (i32, i32) {
    %c0_i32 = arith.constant 0 : i32
    %c0_i32_0 = arith.constant 0 : i32
    %c0_i32_1 = arith.constant 0 : i32
    return %c0_i32, %c0_i32_0 : i32, i32
  }
  func.func @transform_14(%arg0: i32) -> (i32, i32) {
    %c0_i32 = arith.constant 0 : i32
    %c0_i32_0 = arith.constant 0 : i32
    %c0_i32_1 = arith.constant 0 : i32
    return %c0_i32, %c0_i32_0 : i32, i32
  }
  func.func @transform_15(%arg0: i32) -> (i32, i32) {
    %c0_i32 = arith.constant 0 : i32
    %c0_i32_0 = arith.constant 0 : i32
    %c0_i32_1 = arith.constant 0 : i32
    return %c0_i32, %c0_i32_0 : i32, i32
  }
  func.func @transform_16(%arg0: i32) -> (i32, i32) {
    %c0_i32 = arith.constant 0 : i32
    %c0_i32_0 = arith.constant 0 : i32
    %c0_i32_1 = arith.constant 0 : i32
    return %c0_i32, %c0_i32_0 : i32, i32
  }
  func.func @transform_17(%arg0: i32) -> (i32, i32) {
    %c0_i32 = arith.constant 0 : i32
    %c0_i32_0 = arith.constant 0 : i32
    %c0_i32_1 = arith.constant 0 : i32
    return %c0_i32, %c0_i32_0 : i32, i32
  }
  func.func @transform_18(%arg0: i32) -> (i32, i32) {
    %c0_i32 = arith.constant 0 : i32
    %c0_i32_0 = arith.constant 0 : i32
    %c0_i32_1 = arith.constant 0 : i32
    return %c0_i32, %c0_i32_0 : i32, i32
  }
  func.func @transform_19(%arg0: i32) -> (i32, i32) {
    %c0_i32 = arith.constant 0 : i32
    %c0_i32_0 = arith.constant 0 : i32
    %c0_i32_1 = arith.constant 0 : i32
    return %c0_i32, %c0_i32_0 : i32, i32
  }
  func.func @transform_20(%arg0: i32) -> (i32, i32) {
    %c0_i32 = arith.constant 0 : i32
    %c0_i32_0 = arith.constant 0 : i32
    %c0_i32_1 = arith.constant 0 : i32
    return %c0_i32, %c0_i32_0 : i32, i32
  }
  func.func @transform_21(%arg0: i32) -> (i32, i32) {
    %c0_i32 = arith.constant 0 : i32
    %c0_i32_0 = arith.constant 0 : i32
    %c0_i32_1 = arith.constant 0 : i32
    return %c0_i32, %c0_i32_0 : i32, i32
  }
  func.func @transform_22(%arg0: i32) -> (i32, i32) {
    %c0_i32 = arith.constant 0 : i32
    %c0_i32_0 = arith.constant 0 : i32
    %c0_i32_1 = arith.constant 0 : i32
    return %c0_i32, %c0_i32_0 : i32, i32
  }
  func.func @transform_23(%arg0: i32) -> (i32, i32) {
    %c0_i32 = arith.constant 0 : i32
    %c0_i32_0 = arith.constant 0 : i32
    %c0_i32_1 = arith.constant 0 : i32
    return %c0_i32, %c0_i32_0 : i32, i32
  }
  func.func @transform_24(%arg0: i32) -> (i32, i32) {
    %c0_i32 = arith.constant 0 : i32
    %c0_i32_0 = arith.constant 0 : i32
    %c0_i32_1 = arith.constant 0 : i32
    return %c0_i32, %c0_i32_0 : i32, i32
  }
  func.func @transform_25(%arg0: i32) -> (i32, i32) {
    %c0_i32 = arith.constant 0 : i32
    %c0_i32_0 = arith.constant 0 : i32
    %c0_i32_1 = arith.constant 0 : i32
    return %c0_i32, %c0_i32_0 : i32, i32
  }
  func.func @transform_26(%arg0: i32) -> (i32, i32) {
    %c0_i32 = arith.constant 0 : i32
    %c0_i32_0 = arith.constant 0 : i32
    %c0_i32_1 = arith.constant 0 : i32
    return %c0_i32, %c0_i32_0 : i32, i32
  }
  func.func @transform_27(%arg0: i32) -> (i32, i32) {
    %c0_i32 = arith.constant 0 : i32
    %c0_i32_0 = arith.constant 0 : i32
    %c0_i32_1 = arith.constant 0 : i32
    return %c0_i32, %c0_i32_0 : i32, i32
  }
  func.func @transform_28(%arg0: i32) -> (i32, i32) {
    %c0_i32 = arith.constant 0 : i32
    %c0_i32_0 = arith.constant 0 : i32
    %c0_i32_1 = arith.constant 0 : i32
    return %c0_i32, %c0_i32_0 : i32, i32
  }
  func.func @transform_29(%arg0: i32) -> (i32, i32) {
    %c0_i32 = arith.constant 0 : i32
    %c0_i32_0 = arith.constant 0 : i32
    %c0_i32_1 = arith.constant 0 : i32
    return %c0_i32, %c0_i32_0 : i32, i32
  }
  func.func @transform_30(%arg0: i32) -> (i32, i32) {
    %c0_i32 = arith.constant 0 : i32
    %c0_i32_0 = arith.constant 0 : i32
    return %arg0, %c0_i32 : i32, i32
  }
}

</mosaic_0001>

<bundles_post_ra>
// kernel: tpu_custom_call.1
= control target key start
LH: loop header
LB: loop body
LE: loop exit
PB: predicated region body
PF: predicated region fallthrough
CT: control target
= control target key end

     0   :  { %s5234_s6 = smov 1   ;;  %s5235_s10 = smov 2   ;;  %s5941_s0 = inlined_call_operand.smem [shape: u32[31], index: -1, kind: input, shape index: {}] }
   0x1   :  { %s5275_s5 = sld [smem:[%s5941_s0]]   ;;  %s5236_s14 = smov 3  }
   0x2   :  { %s5280_s9 = sld [smem:[%s5941_s0 + %s5234_s6]]   ;;  %s5237_s18 = smov 4  }
   0x3   :  { %s5285_s13 = sld [smem:[%s5941_s0 + %s5235_s10]]   ;;  %s5238_s22 = smov 5  }
   0x4   :  { %s5290_s17 = sld [smem:[%s5941_s0 + %s5236_s14]]   ;;  %s5239_s26 = smov 6  }
   0x5   :  { %s5295_s21 = sld [smem:[%s5941_s0 + %s5237_s18]]   ;;  %s5240_s30 = smov 7  }
   0x6   :  { %s5300_s25 = sld [smem:[%s5941_s0 + %s5238_s22]]   ;;  %s5241_s4 = smov 8  }
   0x7   :  { %5955 = sst [smem:[#allocation5_spill]] %s5275_s5  ;;  %s5242_s10 = smov 9  }
   0x8   :  { %5956 = sst [smem:[#allocation6_spill]] %s5280_s9  ;;  %s5243_s15 = smov 10  }
   0x9   :  { %5957 = sst [smem:[#allocation7_spill]] %s5285_s13  ;;  %s5244_s20 = smov 11  }
   0xa   :  { %s5305_s29 = sld [smem:[%s5941_s0 + %s5239_s26]]   ;;  %s5245_s26 = smov 12  }
   0xb   :  { %s5310_s3 = sld [smem:[%s5941_s0 + %s5240_s30]]   ;;  %s5246_s1 = smov 13  }
   0xc   :  { %s5315_s8 = sld [smem:[%s5941_s0 + %s5241_s4]]   ;;  %s5247_s7 = smov 14  }
   0xd   :  { %s5320_s14 = sld [smem:[%s5941_s0 + %s5242_s10]]   ;;  %s5249_s22 = smov 16  }
   0xe   :  { %s5325_s19 = sld [smem:[%s5941_s0 + %s5243_s15]]   ;;  %s5248_s15 = smov 15  }
   0xf   :  { %s5330_s24 = sld [smem:[%s5941_s0 + %s5244_s20]]   ;;  %s5250_s28 = smov 17  }
  0x10   :  { %s5335_s30 = sld [smem:[%s5941_s0 + %s5245_s26]]  }
  0x11   :  { %5958 = sst [smem:[#allocation8_spill]] %s5310_s3 }
  0x12   :  { %5959 = sst [smem:[#allocation9_spill]] %s5315_s8 }
  0x13   :  { %s5340_s6 = sld [smem:[%s5941_s0 + %s5246_s1]]  }
  0x14   :  { %5960 = sst [smem:[#allocation10_spill]] %s5325_s19 }
  0x15   :  { %s5345_s12 = sld [smem:[%s5941_s0 + %s5247_s7]]   ;;  %s5251_s7 = smov 18  }
  0x16   :  { %s5350_s20 = sld [smem:[%s5941_s0 + %s5248_s15]]   ;;  %s5252_s15 = smov 19  }
  0x17   :  { %s5355_s27 = sld [smem:[%s5941_s0 + %s5249_s22]]   ;;  %s5253_s22 = smov 20  }
  0x18   :  { %s5360_s4 = sld [smem:[%s5941_s0 + %s5250_s28]]   ;;  %s5254_s28 = smov 21  }
  0x19   :  { %5961 = sst [smem:[#allocation11_spill]] %s5340_s6 }
  0x1a   :  { %s5365_s9 = sld [smem:[%s5941_s0 + %s5251_s7]]   ;;  %s5255_s7 = smov 22  }
  0x1b   :  { %5962 = sst [smem:[#allocation12_spill]] %s5345_s12 }
  0x1c   :  { %s5370_s19 = sld [smem:[%s5941_s0 + %s5252_s15]]   ;;  %s5256_s15 = smov 23  }
  0x1d   :  { %5963 = sst [smem:[#allocation13_spill]] %s5355_s27 }
  0x1e   :  { %5964 = sst [smem:[#allocation14_spill]] %s5360_s4 }
  0x1f   :  { %s5375_s27 = sld [smem:[%s5941_s0 + %s5253_s22]]   ;;  %s5257_s22 = smov 24  }
  0x20   :  { %5965 = sst [smem:[#allocation15_spill]] %s5365_s9 }
  0x21   :  { %s5380_s4 = sld [smem:[%s5941_s0 + %s5254_s28]]   ;;  %s5258_s28 = smov 25  }
  0x22   :  { %5966 = sst [smem:[#allocation16_spill]] %s5370_s19 }
  0x23   :  { %s5385_s9 = sld [smem:[%s5941_s0 + %s5255_s7]]   ;;  %s5259_s7 = smov 26  }
  0x24   :  { %s5390_s19 = sld [smem:[%s5941_s0 + %s5256_s15]]   ;;  %s5260_s15 = smov 27  }
  0x25   :  { %5967 = sst [smem:[#allocation17_spill]] %s5375_s27 }
  0x26   :  { %s5395_s27 = sld [smem:[%s5941_s0 + %s5257_s22]]   ;;  %s5261_s22 = smov 28  }
  0x27   :  { %5968 = sst [smem:[#allocation18_spill]] %s5380_s4 }
  0x28   :  { %s5400_s4 = sld [smem:[%s5941_s0 + %s5258_s28]]   ;;  %s5262_s28 = smov 29  }
  0x29   :  { %5969 = sst [smem:[#allocation19_spill]] %s5385_s9 }
  0x2a   :  { %5970 = sst [smem:[#allocation20_spill]] %s5390_s19 }
  0x2b   :  { %s5405_s9 = sld [smem:[%s5941_s0 + %s5259_s7]]   ;;  %s5263_s7 = smov 30  }
  0x2c   :  { %5971 = sst [smem:[#allocation21_spill]] %s5395_s27 }
  0x2d   :  { %s5410_s19 = sld [smem:[%s5941_s0 + %s5260_s15]]  }
  0x2e   :  { %5972 = sst [smem:[#allocation22_spill]] %s5400_s4 }
  0x2f   :  { %s5415_s27 = sld [smem:[%s5941_s0 + %s5261_s22]]  }
  0x30   :  { %s5420_s4 = sld [smem:[%s5941_s0 + %s5262_s28]]  }
  0x31   :  { %5973 = sst [smem:[#allocation23_spill]] %s5405_s9 }
  0x32   :  { %s5425_s9 = sld [smem:[%s5941_s0 + %s5263_s7]]  }
  0x36   :  { %5974 = sst [smem:[#allocation24_spill]] %s5420_s4 }
  0x37   :  { %66 = vsyncpa [#allocation3], 0 }
  0x38   :  { %68 = vsyncpa [#allocation3 + $0x1], 0  ;;  %s5427_s15 = smov 0   ;;  %s5429_s16 = smov 0  }
  0x39   :  { %s5431_s18 = smov 0   ;;  %s5433_s22 = smov 0  }
  0x3a LB: > { %s5975_s3 = sld [smem:[#allocation8_spill]]  ;;  %s5448_s0 = sadd.s32 4294967295, %s5232_s22   ;;  %s5220_s15 = sphi %s5427_s15, %s5997_s15   ;;  %s5232_s22 = sphi %s5433_s22, %s6000_s22   ;;  %s5228_s18 = sphi %s5431_s18, %s5999_s18   ;;  %s5224_s16 = sphi %s5429_s16, %s5998_s16  }
  0x3b   : > { %s4313_s23 = sadd.s32 4294967294, %s5232_s22   ;;  %s5452_s26 = sadd.s32 1, %s5232_s22  }
  0x3c   : > { %s736_s28 = sadd.s32 1, %s5228_s18  ;;  %s733_s1 = ssub.s32 %s5232_s22, %s5452_s26 }
  0x3d   : > { %p746_p0 = scmp.ne.s32.totalorder %s5228_s18, %s5224_s16  ;;  %p734_p1 = scmp.eq.s32.totalorder %s733_s1, 0 }
  0x3e   : > { %p747_p2 = scmp.eq.s32.totalorder %s5448_s0, 1  ;;  %p752_p3 = scmp.ne.s32.totalorder %s5224_s16, %s5220_s15 }
  0x3f   : > { %p753_p4 = scmp.eq.s32.totalorder %s4313_s23, 1  ;;  %p4316_p7 = scmp.ge.s32.totalorder %s5232_s22, 1 }
  0x40   : > { %s5463_s2 = scalar_select %p734_p1, %s5228_s18, %s736_s28  }
  0x41   : > { %p5465_p5 = por %p747_p2, %p746_p0  ;;  %p5469_p6 = por %p753_p4, %p752_p3 }
  0x42   : > { %p894_p8 = scmp.lt.s32.totalorder %s5232_s22, 3 }
  0x44   : > { %p895_p9 = pnand %p4316_p7, %p894_p8 }
  0x45   : > { %s5978_s5 = sld [smem:[#allocation5_spill]] (!%p895_p9)  ;;  %s4318_s11 = sshll.u32 (!%p895_p9), %s5448_s0, 2 }
  0x46   : > { %898 = sbr.rel (%p895_p9) target bundleno = 3137 (0xc41), region = 140  ;;  %p996_p10 = scmp.lt.s32.totalorder (!%p895_p9), %s4318_s11, 7 }
  0x47   : > { %s4320_s1 = sshll.u32 (!%p895_p9), %s5448_s0, 1  ;;  %s5979_s13 = sld [smem:[#allocation7_spill]] (!%p895_p9) }
  0x48   : > { %p1002_p11 = scmp.lt.s32.totalorder (!%p895_p9), %s4320_s1, 3  ;;  %s5980_s8 = sld [smem:[#allocation9_spill]] (!%p895_p9) }
  0x49   : > { %s5981_s6 = sld [smem:[#allocation11_spill]] (!%p895_p9) }
  0x4a   : > { %s5982_s12 = sld [smem:[#allocation12_spill]] (!%p895_p9) }
  0x4b   : > { %v1034_v0 = vld [vmem:[%s5300_s25 + $0x8] sm:$0x1]  ;;  %vm1055_vm0 = vcmask 1040384   ;;  %v1033_v1 = vld [vmem:[%s5300_s25] sm:$0xff]  ;;  %s6002_s11 = smov (!%p996_p10, %s4318_s11), 7  ;;  %vm1042_vm1 = vcmask 72704  }
  0x4c   : > { %4723 = vmatprep.subr.msk.mxu0 %vm1055_vm0, %v1034_v0  ;;  %s4319_s23 = sshll.u32 %s6002_s11, 3  ;;  %v1151_v6 = vld [vmem:[%s5975_s3 + $0x18] sm:$0xff]  ;;  %v1150_v7 = vld [vmem:[%s5975_s3 + $0x10] sm:$0xff]  ;;  %v1149_v8 = vld [vmem:[%s5975_s3 + $0x8] sm:$0xff]  ;;  %s6004_s1 = smov (!%p1002_p11, %s4320_s1), 3  ;;  %vm1159_vm2 = vcmask 261120  }
  0x4d   : > { %4724 = vmatpush3.msk.msra.mxu0 %vm1055_vm0, %v1034_v0  ;;  %s999_s28 = scalar_lea.vmem %s5978_s5, %s4319_s23  ;;  %4733 = vmatprep.subr.mxu1 %v1151_v6  ;;  %v1148_v9 = vld [vmem:[%s5975_s3] sm:$0xff]  ;;  %s4497_s11 = sshll.u32 %s6004_s1, 5  ;;  %vm1377_vm3 = vcmask 130048   ;;  %v1264_v27 = vld [vmem:[%s5320_s14 + $0x18] sm:$0xff]  ;;  %v1263_v28 = vld [vmem:[%s5320_s14 + $0x10] sm:$0xff]  ;;  %vm2082_vm4 = vcmask 1042432  }
  0x4e   : > { %4725 = vmatprep.subr.mxu0 %v1033_v1  ;;  %v1029_v2 = vld [vmem:[%s999_s28] sm:$0xff]  ;;  %v1030_v3 = vld [vmem:[%s999_s28 + $0x8] sm:$0xff]  ;;  %v5481_v4 = vld [vmem:[%s999_s28 + $0x10] sm:$0xff]  ;;  %4734 = vmatpush3.msra.mxu1 %v1151_v6  ;;  %s5504_s23 = scalar_lea.vmem %s5979_s13, %s4497_s11  ;;  %vm2057_vm5 = vcmask 23552   ;;  %s5987_s3 = sld [smem:[#allocation16_spill]] }
  0x4f   : > { %4726 = vmatpush3.msra.mxu0 %v1033_v1  ;;  %4727 = vmatprep.mubr.msk.f32.mxu0 %vm1042_vm1, %v1029_v2  ;;  %v5487_v5 = vld [vmem:[%s999_s28 + $0x18] sm:$0xff]  ;;  %v4331_v10 = vld [vmem:[%s5305_s29] ss:$0 sm:$0xff]  ;;  %v5515_v24 = vld [vmem:[%s5504_s23 + $0x8] sm:$0xff]  ;;  %s5533_s28 = scalar_lea.vmem %s5290_s17, %s4497_s11  ;;  %s4329_s11 = sshll.u32 %s5448_s0, 3 }
  0x50   : > { %4728 = vmatmul.mubr.msk.f32.vlgmr.msra.gmra.mxu0 %vm1042_vm1, %v1030_v3  ;;  %4735 = vmatprep.subr.mxu1 %v1150_v7  ;;  %v5508_v23 = vld [vmem:[%s5504_s23] sm:$0xff]  ;;  %v5518_v25 = vld [vmem:[%s5504_s23 + $0x10] sm:$0xff]  ;;  %v5525_v26 = vld [vmem:[%s5504_s23 + $0x18] sm:$0xff]  ;;  %p1023_p12 = scmp.lt.s32.totalorder %s4329_s11, 15  ;;  %s4496_s5 = sshll.u32 %s6004_s1, 4 }
  0x51   : > { %4730 = vmatprep.mubr.msk.f32.mxu0 %vm1042_vm1, %v5481_v4  ;;  %4736 = vmatpush3.msra.mxu1 %v1150_v7  ;;  %v5537_v29 = vld [vmem:[%s5533_s28] sm:$0xff]  ;;  %v5542_v30 = vld [vmem:[%s5533_s28 + $0x8] sm:$0xff]  ;;  %v5549_v33 = vld [vmem:[%s5533_s28 + $0x10] sm:$0xff]  ;;  %s5994_s1 = sld [smem:[#allocation18_spill]] }
  0x52   : > { %4737 = vmatprep.subr.mxu1 %v1149_v8  ;;  %4747 = vmatprep.subr.mxu0 %v1264_v27  ;;  %v1262_v31 = vld [vmem:[%s5320_s14 + $0x8] sm:$0xff]  ;;  %v1261_v32 = vld [vmem:[%s5320_s14] sm:$0xff]  ;;  %v5554_v34 = vld [vmem:[%s5533_s28 + $0x18] sm:$0xff]  ;;  %s6006_s11 = smov (!%p1023_p12, %s4329_s11), 15  ;;  %s5996_s4 = sld [smem:[#allocation24_spill]] }
  0x53   : > { %4738 = vmatpush3.msra.mxu1 %v1149_v8  ;;  %4748 = vmatpush3.msra.mxu0 %v1264_v27  ;;  %v1783_v35 = vld [vmem:[%s5335_s30 + $0x8] sm:$0x1]  ;;  %v1782_v36 = vld [vmem:[%s5335_s30] sm:$0xff]  ;;  %v5581_v52 = vld [vmem:[%s5504_s23 + $0x30] sm:$0xff] }
  0x54   : > { %4731 = vmatmul.mubr.msk.f32.gmra.mxu0 %vm1042_vm1, %v5487_v5  ;;  %4739 = vmatprep.subr.mxu1 %v1148_v9  ;;  %v4337_v37 = vld [vmem:[%s5980_s8] ss:$0 sm:$0xff]  ;;  %v5578_v51 = vld [vmem:[%s5504_s23 + $0x28] sm:$0xff]  ;;  %v5588_v53 = vld [vmem:[%s5504_s23 + $0x38] sm:$0xff]  ;;  %s4499_s8 = sshll.u32 %s5448_s0, 9  ;;  %s5264_s0 = smov [#allocation2]  }
  0x55   : > { %4740 = vmatpush3.msra.mxu1 %v1148_v9  ;;  %4749 = vmatprep.subr.mxu0 %v1263_v28  ;;  %v5569_v50 = vld [vmem:[%s5504_s23 + $0x20] sm:$0xff]  ;;  %v1781_v54 = vld [vmem:[%s5330_s24 + $0x8] sm:$0x1]  ;;  %v5606_v58 = vld [vmem:[%s5533_s28 + $0x30] sm:$0xff]  ;;  %s4330_s23 = sshll.u32 %s6006_s11, 3  ;;  %s5983_s11 = sld [smem:[#allocation14_spill]] }
  0x56   : > { %4761 = vmatprep.subr.mxu1 %v1030_v3  ;;  %4750 = vmatpush3.msra.mxu0 %v1263_v28  ;;  %v5594_v55 = vld [vmem:[%s5533_s28 + $0x20] sm:$0xff]  ;;  %v5603_v57 = vld [vmem:[%s5533_s28 + $0x28] sm:$0xff]  ;;  %v5614_v61 = vld [vmem:[%s5533_s28 + $0x38] sm:$0xff]  ;;  %s1026_s28 = scalar_lea.vmem %s5295_s21, %s4330_s23  ;;  %s5984_s23 = sld [smem:[#allocation20_spill]] }
  0x57   : > { %4751 = vmatprep.subr.mxu0 %v1262_v31  ;;  %v1780_v59 = vld [vmem:[%s5330_s24] sm:$0xff]  ;;  %v2054_v27 = vld [vmem:[%s1026_s28 + $0x30] sm:$0xff]  ;;  %v2055_v28 = vld [vmem:[%s1026_s28 + $0x38] sm:$0xff] }
  0x58   : > { %4752 = vmatpush3.msra.mxu0 %v1262_v31  ;;  %v2225_v31 = vld [vmem:[%s5350_s20 + $0x18] sm:$0xff] }
  0x59   : > { %4753 = vmatprep.subr.mxu0 %v1261_v32 }
  0x5a   : > { %4754 = vmatpush3.msra.mxu0 %v1261_v32  ;;  %v2224_v32 = vld [vmem:[%s5350_s20 + $0x10] sm:$0xff] }
  0x5b   : > { %4771 = vmatprep.subr.mxu0 %v5487_v5 }
 0x110   : > { %v4729_v11 = vpop.f32.mrf.mxu0 }
 0x111   : > { %v1131_v12 = vadd.f32 %v4729_v11, %v4331_v10 }
 0x112   : > { %v1125_v13 = vpop.f32.mrf.mxu0 }
 0x113   : > { %v1126_v14 = vadd.f32 %v4331_v10, %v1125_v13  ;;  %v1145_v17 = vmax.f32 %v1131_v12, 0.0 }
 0x114   : > { %v4732_v15 = vpop.f32.mrf.mxu0 }
 0x115   : > { %v1144_v16 = vmax.f32 %v1126_v14, 0.0  ;;  %v1141_v18 = vadd.f32 %v4732_v15, %v4331_v10 }
 0x116   : > { %v1135_v19 = vpop.f32.mrf.mxu0 }
 0x117   : > { %v1136_v20 = vadd.f32 %v4331_v10, %v1135_v19  ;;  %4741 = vmatprep.mubr.msk.f32.mxu1 %vm1159_vm2, %v1144_v16  ;;  %v1147_v22 = vmax.f32 %v1141_v18, 0.0  ;;  %v2049_v18 = vld [vmem:[%s1026_s28 + $0x8] sm:$0xff]  ;;  %v2050_v19 = vld [vmem:[%s1026_s28 + $0x10] sm:$0xff] }
 0x118   : > { %4742 = vmatmul.mubr.msk.f32.vlgmr.msra.gmra.mxu1 %vm1159_vm2, %v1145_v17  ;;  %v2048_v17 = vld [vmem:[%s1026_s28] sm:$0xff] }
 0x119   : > { %v1146_v21 = vmax.f32 %v1136_v20, 0.0  ;;  %4762 = vmatpush3.msra.mxu1 %v1030_v3  ;;  %v2051_v20 = vld [vmem:[%s1026_s28 + $0x18] sm:$0xff] }
 0x11a   : > { %4763 = vmatprep.subr.mxu1 %v1029_v2 }
 0x11b   : > { %4744 = vmatprep.mubr.msk.f32.mxu1 %vm1159_vm2, %v1146_v21  ;;  %4764 = vmatpush3.msra.mxu1 %v1029_v2  ;;  %v2052_v21 = vld [vmem:[%s1026_s28 + $0x20] sm:$0xff] }
 0x11c   : > { %4745 = vmatmul.mubr.msk.f32.gmra.mxu1 %vm1159_vm2, %v1147_v22  ;;  %4781 = vmatprep.subr.mxu1 %v1030_v3  ;;  %v2053_v22 = vld [vmem:[%s1026_s28 + $0x28] sm:$0xff]  ;;  %s5985_s28 = sld [smem:[#allocation13_spill]] }
 0x11d   : > { %4765 = vmatprep.mubr.msk.f32.mxu1 %vm1377_vm3, %v5508_v23 }
 0x120   : > { %4766 = vmatmul.mubr.msk.f32.vlgmr.msra.gmra.mxu1 %vm1377_vm3, %v5515_v24 }
 0x121   : > { %4768 = vmatprep.mubr.msk.f32.mxu1 %vm1377_vm3, %v5518_v25  ;;  %4782 = vmatpush3.msra.mxu1 %v1030_v3 }
 0x122   : > { %4783 = vmatprep.subr.mxu1 %v1029_v2 }
 0x123   : > { %4784 = vmatpush3.msra.mxu1 %v1029_v2 }
 0x124   : > { %4769 = vmatmul.mubr.msk.f32.gmra.mxu1 %vm1377_vm3, %v5525_v26  ;;  %4801 = vmatprep.subr.msk.mxu1 %vm1055_vm0, %v1783_v35 }
 0x125   : > { %4785 = vmatprep.mubr.msk.f32.mxu1 %vm1377_vm3, %v5537_v29 }
 0x128   : > { %4786 = vmatmul.mubr.msk.f32.vlgmr.msra.gmra.mxu1 %vm1377_vm3, %v5542_v30 }
 0x129   : > { %4788 = vmatprep.mubr.msk.f32.mxu1 %vm1377_vm3, %v5549_v33  ;;  %4802 = vmatpush3.msk.msra.mxu1 %vm1055_vm0, %v1783_v35  ;;  %v2223_v35 = vld [vmem:[%s5350_s20 + $0x8] sm:$0xff] }
 0x12a   : > { %4803 = vmatprep.subr.mxu1 %v1782_v36 }
 0x12b   : > { %4804 = vmatpush3.msra.mxu1 %v1782_v36  ;;  %v2222_v36 = vld [vmem:[%s5350_s20] sm:$0xff] }
 0x12c   : > { %4789 = vmatmul.mubr.msk.f32.gmra.mxu1 %vm1377_vm3, %v5554_v34 }
 0x1d8   : > { %v4743_v38 = vpop.f32.mrf.mxu1 }
 0x1d9   : > { %v1244_v39 = vadd.f32 %v4743_v38, %v4337_v37 }
 0x1da   : > { %v1238_v40 = vpop.f32.mrf.mxu1 }
 0x1db   : > { %v1239_v41 = vadd.f32 %v4337_v37, %v1238_v40  ;;  %v1258_v44 = vmax.f32 %v1244_v39, 0.0 }
 0x1dc   : > { %v4746_v42 = vpop.f32.mrf.mxu1 }
 0x1dd   : > { %v1257_v43 = vmax.f32 %v1239_v41, 0.0  ;;  %v1254_v45 = vadd.f32 %v4746_v42, %v4337_v37 }
 0x1de   : > { %v1248_v46 = vpop.f32.mrf.mxu1 }
 0x1df   : > { %v1249_v47 = vadd.f32 %v4337_v37, %v1248_v46  ;;  %4755 = vmatprep.mubr.msk.f32.mxu0 %vm1159_vm2, %v1257_v43  ;;  %v1260_v49 = vmax.f32 %v1254_v45, 0.0 }
 0x1e0   : > { %4756 = vmatmul.mubr.msk.f32.vlgmr.msra.gmra.mxu0 %vm1159_vm2, %v1258_v44  ;;  %v4767_v56 = vpop.f32.mrf.mxu1 }
 0x1e1   : > { %v1259_v48 = vmax.f32 %v1249_v47, 0.0  ;;  %4772 = vmatpush3.msra.mxu0 %v5487_v5 }
 0x1e2   : > { %4773 = vmatprep.subr.mxu0 %v5481_v4  ;;  %v1456_v60 = vpop.f32.mrf.mxu1 }
 0x1e3   : > { %4758 = vmatprep.mubr.msk.f32.mxu0 %vm1159_vm2, %v1259_v48  ;;  %4774 = vmatpush3.msra.mxu0 %v5481_v4 }
 0x1e4   : > { %4759 = vmatmul.mubr.msk.f32.gmra.mxu0 %vm1159_vm2, %v1260_v49  ;;  %4791 = vmatprep.subr.mxu0 %v5487_v5  ;;  %v4770_v62 = vpop.f32.mrf.mxu1 }
 0x1e5   : > { %4775 = vmatprep.mubr.msk.f32.mxu0 %vm1377_vm3, %v5569_v50 }
 0x1e6   : > { %v1466_v63 = vpop.f32.mrf.mxu1 }
 0x1e8   : > { %4776 = vmatmul.mubr.msk.f32.vlgmr.msra.gmra.mxu0 %vm1377_vm3, %v5578_v51  ;;  %v4787_v0 = vpop.f32.mrf.mxu1 }
 0x1e9   : > { %4778 = vmatprep.mubr.msk.f32.mxu0 %vm1377_vm3, %v5581_v52  ;;  %4792 = vmatpush3.msra.mxu0 %v5487_v5 }
 0x1ea   : > { %4793 = vmatprep.subr.mxu0 %v5481_v4  ;;  %v1659_v1 = vpop.f32.mrf.mxu1 }
 0x1eb   : > { %4794 = vmatpush3.msra.mxu0 %v5481_v4  ;;  %4805 = vmatprep.mubr.msk.f32.mxu1 %vm1042_vm1, %v1659_v1  ;;  %v2056_v4 = vld [vmem:[%s5981_s6] sm:$0x7] }
 0x1ec   : > { %4779 = vmatmul.mubr.msk.f32.gmra.mxu0 %vm1377_vm3, %v5588_v53  ;;  %4817 = vmatprep.subr.msk.mxu0 %vm1055_vm0, %v1781_v54  ;;  %v4790_v2 = vpop.f32.mrf.mxu1 }
 0x1ed   : > { %4795 = vmatprep.mubr.msk.f32.mxu0 %vm1377_vm3, %v5594_v55  ;;  %4806 = vmatmul.mubr.msk.f32.vlgmr.msra.gmra.mxu1 %vm1042_vm1, %v4787_v0 }
 0x1ee   : > { %v1669_v3 = vpop.f32.mrf.mxu1  ;;  %4833 = vmatprep.subr.msk.mxu1 %vm2082_vm4, %v2056_v4 }
 0x1ef   : > { %4808 = vmatprep.mubr.msk.f32.mxu1 %vm1042_vm1, %v1669_v3  ;;  %4834 = vmatpush3.msk.msra.mxu1 %vm2082_vm4, %v2056_v4 }
 0x1f0   : > { %4796 = vmatmul.mubr.msk.f32.vlgmr.msra.gmra.mxu0 %vm1377_vm3, %v5603_v57 }
 0x1f1   : > { %4798 = vmatprep.mubr.msk.f32.mxu0 %vm1377_vm3, %v5606_v58  ;;  %4818 = vmatpush3.msk.msra.mxu0 %vm1055_vm0, %v1781_v54 }
 0x1f2   : > { %4819 = vmatprep.subr.mxu0 %v1780_v59  ;;  %4809 = vmatmul.mubr.msk.f32.gmra.mxu1 %vm1042_vm1, %v4790_v2 }
 0x1f3   : > { %4820 = vmatpush3.msra.mxu0 %v1780_v59 }
 0x1f4   : > { %4799 = vmatmul.mubr.msk.f32.gmra.mxu0 %vm1377_vm3, %v5614_v61  ;;  %4847 = vmatprep.subr.mxu0 %v2225_v31 }
 0x1f5   : > { %4821 = vmatprep.mubr.msk.f32.mxu0 %vm1042_vm1, %v1456_v60 }
 0x1f8   : > { %4822 = vmatmul.mubr.msk.f32.vlgmr.msra.gmra.mxu0 %vm1042_vm1, %v4767_v56 }
 0x1f9   : > { %4824 = vmatprep.mubr.msk.f32.mxu0 %vm1042_vm1, %v1466_v63  ;;  %4848 = vmatpush3.msra.mxu0 %v2225_v31 }
 0x1fa   : > { %4849 = vmatprep.subr.mxu0 %v2224_v32 }
 0x1fb   : > { %4850 = vmatpush3.msra.mxu0 %v2224_v32 }
 0x1fc   : > { %4825 = vmatmul.mubr.msk.f32.gmra.mxu0 %vm1042_vm1, %v4770_v62  ;;  %4851 = vmatprep.subr.mxu0 %v2223_v35  ;;  %v4398_v62 = vld [vmem:[%s5982_s12] ss:$0 sm:$0xff]  ;;  %s5176_s12 = sshll.u32 %s5264_s0, 4  ;;  %s5177_s12 = int_to_ptr.vmem [resolvable:$false] %s5176_s12 }
 0x1fd   : > { %4852 = vmatpush3.msra.mxu0 %v2223_v35  ;;  %s5178_s13 = scalar_lea.vmem %s5177_s12, 1024 }
 0x1fe   : > { %4853 = vmatprep.subr.mxu0 %v2222_v36 }
 0x1ff   : > { %4854 = vmatpush3.msra.mxu0 %v2222_v36 }
 0x2a0   : > { %v5628_v5 = vpop.f32.mrf.mxu0 }
 0x2a2   : > { %v5630_v6 = vpop.f32.mrf.mxu0 }
 0x2a4   : > { %v5632_v7 = vpop.f32.mrf.mxu0 }
 0x2a6   : > { %v5635_v8 = vpop.f32.mrf.mxu0 }
 0x2a8   : > { %v4777_v9 = vpop.f32.mrf.mxu0 }
 0x2aa   : > { %v1558_v10 = vpop.f32.mrf.mxu0 }
 0x2ab   : > { %4827 = vmatprep.mubr.msk.f32.mxu0 %vm1042_vm1, %v1558_v10 }
 0x2ac   : > { %v4780_v11 = vpop.f32.mrf.mxu0  ;;  %4828 = vmatmul.mubr.msk.f32.gmra.mxu0 %vm1042_vm1, %v4777_v9 }
 0x2ad   : > { %v4807_v37 = vpop.f32.mrf.mxu1 }
 0x2ae   : > { %v1568_v12 = vpop.f32.mrf.mxu0 }
 0x2af   : > { %4830 = vmatprep.mubr.msk.f32.mxu0 %vm1042_vm1, %v1568_v12  ;;  %v1877_v38 = vpop.f32.mrf.mxu1 }
 0x2b0   : > { %v4797_v13 = vpop.f32.mrf.mxu0  ;;  %4831 = vmatmul.mubr.msk.f32.gmra.mxu0 %vm1042_vm1, %v4780_v11 }
 0x2b2   : > { %v1761_v14 = vpop.f32.mrf.mxu0  ;;  %v4810_v40 = vpop.f32.mrf.mxu1 }
 0x2b3   : > { %4811 = vmatprep.mubr.msk.f32.mxu1 %vm1042_vm1, %v1761_v14 }
 0x2b4   : > { %v4800_v15 = vpop.f32.mrf.mxu0  ;;  %4812 = vmatmul.mubr.msk.f32.gmra.mxu1 %vm1042_vm1, %v4797_v13  ;;  %v1887_v42 = vpop.f32.mrf.mxu1 }
 0x2b6   : > { %v1771_v16 = vpop.f32.mrf.mxu0 }
 0x2b7   : > { %4814 = vmatprep.mubr.msk.f32.mxu1 %vm1042_vm1, %v1771_v16 }
 0x2b8   : > { %4815 = vmatmul.mubr.msk.f32.gmra.mxu1 %vm1042_vm1, %v4800_v15  ;;  %v4823_v39 = vpop.f32.mrf.mxu0 }
 0x2b9   : > { %4835 = vmatprep.mubr.msk.f32.mxu1 %vm2057_vm5, %v2048_v17  ;;  %v2015_v49 = vadd.f32 %v4823_v39, %v4807_v37 }
 0x2ba   : > { %v2009_v41 = vpop.f32.mrf.mxu0 }
 0x2bb   : > { %v2010_v59 = vadd.f32 %v2009_v41, %v1877_v38 }
 0x2bc   : > { %4836 = vmatmul.mubr.msk.f32.vlgmr.msra.gmra.mxu1 %vm2057_vm5, %v2049_v18  ;;  %v4826_v44 = vpop.f32.mrf.mxu0 }
 0x2bd   : > { %4838 = vmatprep.mubr.msk.f32.mxu1 %vm2057_vm5, %v2050_v19  ;;  %v2025_v0 = vadd.f32 %v4826_v44, %v4810_v40 }
 0x2be   : > { %v2019_v47 = vpop.f32.mrf.mxu0 }
 0x2bf   : > { %v2020_v9 = vadd.f32 %v2019_v47, %v1887_v42 }
 0x2c0   : > { %4839 = vmatmul.mubr.msk.f32.gmra.mxu1 %vm2057_vm5, %v2051_v20 }
 0x2c1   : > { %4841 = vmatprep.mubr.msk.f32.mxu1 %vm2057_vm5, %v2052_v21 }
 0x2c4   : > { %4842 = vmatmul.mubr.msk.f32.gmra.mxu1 %vm2057_vm5, %v2053_v22 }
 0x2c5   : > { %4844 = vmatprep.mubr.msk.f32.mxu1 %vm2057_vm5, %v2054_v27 }
 0x2c8   : > { %4845 = vmatmul.mubr.msk.f32.gmra.mxu1 %vm2057_vm5, %v2055_v28 }
 0x36c   : > { %v4829_v54 = vpop.f32.mrf.mxu0 }
 0x36e   : > { %v2029_v2 = vpop.f32.mrf.mxu0 }
 0x370   : > { %v4832_v16 = vpop.f32.mrf.mxu0 }
 0x372   : > { %v2039_v35 = vpop.f32.mrf.mxu0 }
 0x374   : > { %v4813_v43 = vpop.f32.mrf.mxu1 }
 0x375   : > { %v2035_v13 = vadd.f32 %v4829_v54, %v4813_v43  ;;  %v2373_v54 = vld [vmem:[%s5983_s11 + $0x18] sm:$0xff] }
 0x376   : > { %v1897_v45 = vpop.f32.mrf.mxu1  ;;  %4867 = vmatprep.subr.mxu1 %v2373_v54 }
 0x377   : > { %v2030_v20 = vadd.f32 %v2029_v2, %v1897_v45  ;;  %4868 = vmatpush3.msra.mxu1 %v2373_v54 }
 0x378   : > { %v4816_v46 = vpop.f32.mrf.mxu1 }
 0x379   : > { %v2045_v28 = vadd.f32 %v4832_v16, %v4816_v46 }
 0x37a   : > { %v1907_v48 = vpop.f32.mrf.mxu1 }
 0x37b   : > { %v2040_v39 = vadd.f32 %v2039_v35, %v1907_v48 }
 0x37c   : > { %v4837_v56 = vpop.f32.mrf.mxu1 }
 0x37d   : > { %v2192_v60 = vadd.f32 %v4837_v56, %v2015_v49  ;;  %v2372_v56 = vld [vmem:[%s5983_s11 + $0x10] sm:$0xff] }
 0x37e   : > { %v2152_v63 = vpop.f32.mrf.mxu1  ;;  %4869 = vmatprep.subr.mxu1 %v2372_v56 }
 0x37f   : > { %v2191_v1 = vadd.f32 %v2152_v63, %v2010_v59  ;;  %v2207_v3 = vadd.f32 %v4398_v62, %v2192_v60  ;;  %4870 = vmatpush3.msra.mxu1 %v2372_v56  ;;  %v2371_v59 = vld [vmem:[%s5983_s11 + $0x8] sm:$0xff]  ;;  %v2370_v60 = vld [vmem:[%s5983_s11] sm:$0xff]  ;;  %s5903_s11 = scalar_lea.hbm %s5425_s9, %s4499_s8 }
 0x380   : > { %v4840_v4 = vpop.f32.mrf.mxu1  ;;  %4871 = vmatprep.subr.mxu1 %v2371_v59  ;;  %v4399_v63 = vld [vmem:[%s5985_s28] ss:$0 sm:$0xff]  ;;  %s5986_s28 = sld [smem:[#allocation10_spill]] }
 0x381   : > { %v2206_v10 = vadd.f32 %v4398_v62, %v2191_v1  ;;  %v2194_v11 = vadd.f32 %v4840_v4, %v2025_v0  ;;  %v2215_v17 = vmax.f32 %v2207_v3, 0.0  ;;  %4872 = vmatpush3.msra.mxu1 %v2371_v59 }
 0x382   : > { %v2162_v12 = vpop.f32.mrf.mxu1  ;;  %4873 = vmatprep.subr.mxu1 %v2370_v60 }
 0x383   : > { %v2214_v14 = vmax.f32 %v2206_v10, 0.0  ;;  %v2193_v15 = vadd.f32 %v2162_v12, %v2020_v9  ;;  %v2209_v18 = vadd.f32 %v4398_v62, %v2194_v11  ;;  %4874 = vmatpush3.msra.mxu1 %v2370_v60 }
 0x384   : > { %v4843_v19 = vpop.f32.mrf.mxu1 }
 0x385   : > { %v2208_v21 = vadd.f32 %v4398_v62, %v2193_v15  ;;  %v2196_v22 = vadd.f32 %v4843_v19, %v2035_v13  ;;  %4855 = vmatprep.mubr.msk.f32.mxu0 %vm1159_vm2, %v2214_v14  ;;  %v2217_v36 = vmax.f32 %v2209_v18, 0.0  ;;  %v2660_v14 = vld [vmem:[%s5984_s23 + $0x10] sm:$0xff] }
 0x386   : > { %v2172_v27 = vpop.f32.mrf.mxu1  ;;  %4856 = vmatmul.mubr.msk.f32.vlgmr.msra.gmra.mxu0 %vm1159_vm2, %v2215_v17  ;;  %v2659_v17 = vld [vmem:[%s5984_s23 + $0x8] sm:$0xff] }
 0x387   : > { %v2216_v31 = vmax.f32 %v2208_v21, 0.0  ;;  %v2195_v32 = vadd.f32 %v2172_v27, %v2030_v20  ;;  %v2211_v37 = vadd.f32 %v4398_v62, %v2196_v22  ;;  %v2658_v22 = vld [vmem:[%s5984_s23] sm:$0xff] }
 0x388   : > { %v4846_v38 = vpop.f32.mrf.mxu1 }
 0x389   : > { %v2210_v40 = vadd.f32 %v4398_v62, %v2195_v32  ;;  %v2198_v41 = vadd.f32 %v4846_v38, %v2045_v28  ;;  %4858 = vmatprep.mubr.msk.f32.mxu0 %vm1159_vm2, %v2216_v31  ;;  %v2219_v45 = vmax.f32 %v2211_v37, 0.0  ;;  %v4342_v31 = vld [vmem:[%s5986_s28] ss:$0 sm:$0xff]  ;;  %s5988_s28 = sld [smem:[#allocation15_spill]] }
 0x38a   : > { %v2182_v42 = vpop.f32.mrf.mxu1  ;;  %4859 = vmatmul.mubr.msk.f32.gmra.mxu0 %vm1159_vm2, %v2217_v36  ;;  %v1351_v37 = vadd.f32 %v4342_v31, %v5630_v6 }
 0x38b   : > { %v2218_v43 = vmax.f32 %v2210_v40, 0.0  ;;  %v2197_v44 = vadd.f32 %v2182_v42, %v2040_v39  ;;  %v2213_v46 = vadd.f32 %v4398_v62, %v2198_v41  ;;  %v1356_v40 = vadd.f32 %v5628_v5, %v4342_v31 }
 0x38c   : > { %v1369_v42 = vmax.f32 %v1351_v37, 0.0 }
 0x38d   : > { %v2212_v47 = vadd.f32 %v4398_v62, %v2197_v44  ;;  %4861 = vmatprep.mubr.msk.f32.mxu0 %vm1159_vm2, %v2218_v43  ;;  %v2221_v49 = vmax.f32 %v2213_v46, 0.0  ;;  %v2661_v62 = vld [vmem:[%s5984_s23 + $0x18] sm:$0xff]  ;;  %v1361_v43 = vadd.f32 %v4342_v31, %v5635_v8  ;;  %v1370_v6 = vmax.f32 %v1356_v40, 0.0  ;;  %v2520_v46 = vld [vmem:[%s5987_s3 + $0x10] sm:$0xff] }
 0x38e   : > { %4862 = vmatmul.mubr.msk.f32.gmra.mxu0 %vm1159_vm2, %v2219_v45  ;;  %4907 = vmatprep.subr.mxu1 %v2661_v62  ;;  %v1366_v44 = vadd.f32 %v5632_v7, %v4342_v31  ;;  %v2521_v8 = vld [vmem:[%s5987_s3 + $0x18] sm:$0xff] }
 0x38f   : > { %v2220_v48 = vmax.f32 %v2212_v47, 0.0  ;;  %v1371_v45 = vmax.f32 %v1361_v43, 0.0  ;;  %4887 = vmatprep.subr.mxu0 %v2521_v8  ;;  %v2519_v47 = vld [vmem:[%s5987_s3 + $0x8] sm:$0xff]  ;;  %v4408_v7 = vld [vmem:[%s5988_s28] ss:$0 sm:$0xff]  ;;  %s5989_s28 = sld [smem:[#allocation6_spill]] }
 0x390   : > { %v1372_v5 = vmax.f32 %v1366_v44, 0.0  ;;  %4888 = vmatpush3.msra.mxu0 %v2521_v8 }
 0x391   : > { %4864 = vmatprep.mubr.msk.f32.mxu0 %vm1159_vm2, %v2220_v48  ;;  %4889 = vmatprep.subr.mxu0 %v2520_v46  ;;  %v2518_v48 = vld [vmem:[%s5987_s3] sm:$0xff]  ;;  %s5990_s3 = sld [smem:[#allocation19_spill]] }
 0x392   : > { %4865 = vmatmul.mubr.msk.f32.gmra.mxu0 %vm1159_vm2, %v2221_v49 }
 0x393   : > { %4890 = vmatpush3.msra.mxu0 %v2520_v46 }
 0x394   : > { %4891 = vmatprep.subr.mxu0 %v2519_v47 }
 0x395   : > { %4892 = vmatpush3.msra.mxu0 %v2519_v47  ;;  %s5708_s6 = scalar_lea.vmem %s5989_s28, %s4496_s5  ;;  %s5991_s5 = sld [smem:[#allocation21_spill]] }
 0x396   : > { %4893 = vmatprep.subr.mxu0 %v2518_v48  ;;  %v5736_v46 = vld [vmem:[%s5708_s6 + $0x8] sm:$0xff]  ;;  %s5995_s28 = sld [smem:[#allocation23_spill]] }
 0x397   : > { %4894 = vmatpush3.msra.mxu0 %v2518_v48  ;;  %v4417_v31 = vld [vmem:[%s5990_s3] ss:$0 sm:$0xff]  ;;  %s5992_s3 = sld [smem:[#allocation22_spill]] }
 0x446   : > { %v4857_v0 = vpop.f32.mrf.mxu0 }
 0x447   : > { %v2329_v1 = vadd.f32 %v4857_v0, %v4399_v63 }
 0x448   : > { %v2323_v2 = vpop.f32.mrf.mxu0 }
 0x449   : > { %v2324_v3 = vadd.f32 %v4399_v63, %v2323_v2  ;;  %v2363_v10 = vmax.f32 %v2329_v1, 0.0 }
 0x44a   : > { %v4860_v4 = vpop.f32.mrf.mxu0 }
 0x44b   : > { %v2362_v9 = vmax.f32 %v2324_v3, 0.0  ;;  %v2339_v11 = vadd.f32 %v4860_v4, %v4399_v63 }
 0x44c   : > { %v2333_v12 = vpop.f32.mrf.mxu0 }
 0x44d   : > { %v2334_v13 = vadd.f32 %v4399_v63, %v2333_v12  ;;  %4875 = vmatprep.mubr.msk.f32.mxu1 %vm1159_vm2, %v2362_v9  ;;  %v2365_v18 = vmax.f32 %v2339_v11, 0.0 }
 0x44e   : > { %v4863_v15 = vpop.f32.mrf.mxu0  ;;  %4876 = vmatmul.mubr.msk.f32.vlgmr.msra.gmra.mxu1 %vm1159_vm2, %v2363_v10 }
 0x44f   : > { %v2364_v16 = vmax.f32 %v2334_v13, 0.0  ;;  %4908 = vmatpush3.msra.mxu1 %v2661_v62  ;;  %v2349_v19 = vadd.f32 %v4863_v15, %v4399_v63 }
 0x450   : > { %v2343_v20 = vpop.f32.mrf.mxu0  ;;  %4909 = vmatprep.subr.mxu1 %v2660_v14 }
 0x451   : > { %v2344_v21 = vadd.f32 %v4399_v63, %v2343_v20  ;;  %4878 = vmatprep.mubr.msk.f32.mxu1 %vm1159_vm2, %v2364_v16  ;;  %4910 = vmatpush3.msra.mxu1 %v2660_v14  ;;  %v2367_v32 = vmax.f32 %v2349_v19, 0.0 }
 0x452   : > { %v4866_v27 = vpop.f32.mrf.mxu0  ;;  %4879 = vmatmul.mubr.msk.f32.gmra.mxu1 %vm1159_vm2, %v2365_v18  ;;  %4911 = vmatprep.subr.mxu1 %v2659_v17 }
 0x453   : > { %v2366_v28 = vmax.f32 %v2344_v21, 0.0  ;;  %4912 = vmatpush3.msra.mxu1 %v2659_v17  ;;  %v2359_v35 = vadd.f32 %v4866_v27, %v4399_v63  ;;  %v5711_v21 = vld [vmem:[%s5708_s6] sm:$0xff] }
 0x454   : > { %v2353_v36 = vpop.f32.mrf.mxu0  ;;  %4913 = vmatprep.subr.mxu1 %v2658_v22 }
 0x455   : > { %v2354_v38 = vadd.f32 %v4399_v63, %v2353_v36  ;;  %4881 = vmatprep.mubr.msk.f32.mxu1 %vm1159_vm2, %v2366_v28  ;;  %4914 = vmatpush3.msra.mxu1 %v2658_v22  ;;  %v2369_v41 = vmax.f32 %v2359_v35, 0.0  ;;  %v5716_v22 = vld [vmem:[%s5708_s6 + $0x10] sm:$0xff] }
 0x456   : > { %4882 = vmatmul.mubr.msk.f32.gmra.mxu1 %vm1159_vm2, %v2367_v32 }
 0x457   : > { %v2368_v39 = vmax.f32 %v2354_v38, 0.0 }
 0x459   : > { %4884 = vmatprep.mubr.msk.f32.mxu1 %vm1159_vm2, %v2368_v39 }
 0x45a   : > { %4885 = vmatmul.mubr.msk.f32.gmra.mxu1 %vm1159_vm2, %v2369_v41 }
 0x45b   : > { %4915 = vmatprep.mubr.msk.f32.mxu1 %vm1159_vm2, %v1369_v42 }
 0x45e   : > { %4916 = vmatmul.mubr.msk.f32.vlgmr.msra.gmra.mxu1 %vm1159_vm2, %v1370_v6 }
 0x45f   : > { %4918 = vmatprep.mubr.msk.f32.mxu1 %vm1159_vm2, %v1371_v45 }
 0x462   : > { %4919 = vmatmul.mubr.msk.f32.gmra.mxu1 %vm1159_vm2, %v1372_v5 }
 0x463   : > { %4940 = vmatprep.mubr.msk.f32.mxu1 %vm1159_vm2, %v5716_v22 }
 0x50e   : > { %v4877_v49 = vpop.f32.mrf.mxu1 }
 0x50f   : > { %v2477_v54 = vadd.f32 %v4877_v49, %v4408_v7  ;;  %v5744_v49 = vld [vmem:[%s5991_s5 + $0x18] sm:$0xff] }
 0x510   : > { %v2471_v56 = vpop.f32.mrf.mxu1 }
 0x511   : > { %v2472_v59 = vadd.f32 %v4408_v7, %v2471_v56  ;;  %v2511_v63 = vmax.f32 %v2477_v54, 0.0 }
 0x512   : > { %v4880_v60 = vpop.f32.mrf.mxu1 }
 0x513   : > { %v2510_v62 = vmax.f32 %v2472_v59, 0.0  ;;  %v2487_v0 = vadd.f32 %v4880_v60, %v4408_v7  ;;  %v5752_v59 = vld [vmem:[%s5991_s5 + $0x10] sm:$0xff] }
 0x514   : > { %v2481_v1 = vpop.f32.mrf.mxu1 }
 0x515   : > { %v2482_v2 = vadd.f32 %v4408_v7, %v2481_v1  ;;  %4895 = vmatprep.mubr.msk.f32.mxu0 %vm1159_vm2, %v2510_v62  ;;  %v2513_v9 = vmax.f32 %v2487_v0, 0.0  ;;  %v5768_v0 = vld [vmem:[%s5991_s5 + $0x8] sm:$0xff]  ;;  %v5773_v1 = vld [vmem:[%s5991_s5] sm:$0xff] }
 0x516   : > { %v4883_v3 = vpop.f32.mrf.mxu1  ;;  %4896 = vmatmul.mubr.msk.f32.vlgmr.msra.gmra.mxu0 %vm1159_vm2, %v2511_v63  ;;  %v5761_v63 = vld [vmem:[%s5708_s6 + $0x18] sm:$0xff]  ;;  %s5993_s6 = sld [smem:[#allocation17_spill]] }
 0x517   : > { %v2512_v4 = vmax.f32 %v2482_v2, 0.0  ;;  %v2497_v10 = vadd.f32 %v4883_v3, %v4408_v7 }
 0x518   : > { %v2491_v11 = vpop.f32.mrf.mxu1 }
 0x519   : > { %v2492_v12 = vadd.f32 %v4408_v7, %v2491_v11  ;;  %4898 = vmatprep.mubr.msk.f32.mxu0 %vm1159_vm2, %v2512_v4  ;;  %v2515_v15 = vmax.f32 %v2497_v10, 0.0 }
 0x51a   : > { %v4886_v13 = vpop.f32.mrf.mxu1  ;;  %4899 = vmatmul.mubr.msk.f32.gmra.mxu0 %vm1159_vm2, %v2513_v9 }
 0x51b   : > { %v2514_v14 = vmax.f32 %v2492_v12, 0.0  ;;  %v2507_v16 = vadd.f32 %v4886_v13, %v4408_v7  ;;  %v4426_v13 = vld [vmem:[%s5992_s3] ss:$0 sm:$0xff]  ;;  %s992_s3 = sand.u32 1, %s5224_s16  }
 0x51c   : > { %v2501_v17 = vpop.f32.mrf.mxu1 }
 0x51d   : > { %v2502_v18 = vadd.f32 %v4408_v7, %v2501_v17  ;;  %4901 = vmatprep.mubr.msk.f32.mxu0 %vm1159_vm2, %v2514_v14  ;;  %v2517_v20 = vmax.f32 %v2507_v16, 0.0 }
 0x51e   : > { %4902 = vmatmul.mubr.msk.f32.gmra.mxu0 %vm1159_vm2, %v2515_v15  ;;  %v4917_v2 = vpop.f32.mrf.mxu1 }
 0x51f   : > { %v2516_v19 = vmax.f32 %v2502_v18, 0.0  ;;  %v5784_v14 = vadd.f32 %v4917_v2, %v4426_v13 }
 0x520   : > { %v2747_v3 = vpop.f32.mrf.mxu1 }
 0x521   : > { %4904 = vmatprep.mubr.msk.f32.mxu0 %vm1159_vm2, %v2516_v19  ;;  %v5786_v16 = vadd.f32 %v4426_v13, %v2747_v3 }
 0x522   : > { %4905 = vmatmul.mubr.msk.f32.gmra.mxu0 %vm1159_vm2, %v2517_v20  ;;  %v4920_v9 = vpop.f32.mrf.mxu1 }
 0x523   : > { %4929 = vmatprep.mubr.msk.f32.mxu0 %vm1159_vm2, %v5711_v21 }
 0x5d6   : > { %v4897_v27 = vpop.f32.mrf.mxu0 }
 0x5d7   : > { %v5723_v37 = vadd.f32 %v4897_v27, %v4417_v31 }
 0x5d8   : > { %v2619_v28 = vpop.f32.mrf.mxu0 }
 0x5d9   : > { %v5728_v41 = vadd.f32 %v4417_v31, %v2619_v28  ;;  %v2767_v6 = vmax.f32 %v5723_v37, 0.0  ;;  %v5790_v28 = vadd.f32 %v4920_v9, %v4426_v13 }
 0x5da   : > { %v4900_v32 = vpop.f32.mrf.mxu0 }
 0x5db   : > { %v5721_v35 = vadd.f32 %v4900_v32, %v4417_v31  ;;  %v2766_v45 = vmax.f32 %v5728_v41, 0.0 }
 0x5dc   : > { %v2629_v36 = vpop.f32.mrf.mxu0 }
 0x5dd   : > { %v2769_v38 = vmax.f32 %v5721_v35, 0.0  ;;  %v5726_v39 = vadd.f32 %v4417_v31, %v2629_v36 }
 0x5de   : > { %v4903_v40 = vpop.f32.mrf.mxu0 }
 0x5df   : > { %v2768_v42 = vmax.f32 %v5726_v39, 0.0  ;;  %4921 = vmatprep.subr.mxu0 %v2769_v38  ;;  %v5738_v47 = vadd.f32 %v4903_v40, %v4417_v31 }
 0x5e0   : > { %v2639_v43 = vpop.f32.mrf.mxu0  ;;  %4922 = vmatpush3.msra.mxu0 %v2769_v38 }
 0x5e1   : > { %4923 = vmatprep.subr.mxu0 %v2768_v42  ;;  %v5746_v54 = vadd.f32 %v4417_v31, %v2639_v43  ;;  %v2771_v60 = vmax.f32 %v5738_v47, 0.0 }
 0x5e2   : > { %v4906_v44 = vpop.f32.mrf.mxu0  ;;  %4924 = vmatpush3.msra.mxu0 %v2768_v42  ;;  %v3393_v42 = vld [vmem:[%s5993_s6 + $0x18] sm:$0xff] }
 0x5e3   : > { %v5733_v5 = vadd.f32 %v4906_v44, %v4417_v31  ;;  %4925 = vmatprep.subr.mxu0 %v2767_v6  ;;  %v2770_v62 = vmax.f32 %v5746_v54, 0.0 }
 0x5e4   : > { %v2649_v8 = vpop.f32.mrf.mxu0  ;;  %4926 = vmatpush3.msra.mxu0 %v2767_v6 }
 0x5e5   : > { %v2773_v48 = vmax.f32 %v5733_v5, 0.0  ;;  %v5741_v7 = vadd.f32 %v4417_v31, %v2649_v8  ;;  %4927 = vmatprep.subr.mxu0 %v2766_v45 }
 0x5e6   : > { %4928 = vmatpush3.msra.mxu0 %v2766_v45 }
 0x5e7   : > { %v2772_v56 = vmax.f32 %v5741_v7, 0.0  ;;  %4930 = vmatmul.mubr.msk.f32.vlgmr.msra.gmra.mxu0 %vm1159_vm2, %v5736_v46  ;;  %4932 = vmatprep.subr.mxu1 %v2773_v48 }
 0x5e8   : > { %4933 = vmatpush3.msra.mxu1 %v2773_v48  ;;  %4943 = vmatprep.subr.mxu0 %v5744_v49 }
 0x5e9   : > { %4934 = vmatprep.subr.mxu1 %v2772_v56  ;;  %4944 = vmatpush3.msra.mxu0 %v5744_v49 }
 0x5ea   : > { %4935 = vmatpush3.msra.mxu1 %v2772_v56  ;;  %4945 = vmatprep.subr.mxu0 %v5752_v59 }
 0x5eb   : > { %4936 = vmatprep.subr.mxu1 %v2771_v60  ;;  %4946 = vmatpush3.msra.mxu0 %v5752_v59 }
 0x5ec   : > { %4937 = vmatpush3.msra.mxu1 %v2771_v60  ;;  %4947 = vmatprep.subr.mxu0 %v5768_v0 }
 0x5ed   : > { %4938 = vmatprep.subr.mxu1 %v2770_v62  ;;  %4948 = vmatpush3.msra.mxu0 %v5768_v0 }
 0x5ee   : > { %4939 = vmatpush3.msra.mxu1 %v2770_v62  ;;  %4949 = vmatprep.subr.mxu0 %v5773_v1 }
 0x5ef   : > { %4941 = vmatmul.mubr.msk.f32.vlgmr.msra.gmra.mxu1 %vm1159_vm2, %v5761_v63  ;;  %4950 = vmatpush3.msra.mxu0 %v5773_v1 }
 0x5f0   : > { %4961 = vmatprep.mubr.msk.f32.mxu1 %vm1377_vm3, %v5508_v23  ;;  %v2757_v23 = vpop.f32.mrf.mxu1 }
 0x5f1   : > { %v5792_v31 = vadd.f32 %v4426_v13, %v2757_v23 }
 0x6a7   : > { %v4931_v4 = vpop.f32.mrf.mxu0 }
 0x6a9   : > { %v2848_v10 = vpop.f32.mrf.mxu0 }
 0x6aa   : > { %4951 = vmatprep.mubr.msk.f32.mxu0 %vm1159_vm2, %v2848_v10 }
 0x6ab   : > { %4952 = vmatmul.mubr.msk.f32.vlgmr.msra.gmra.mxu0 %vm1159_vm2, %v4931_v4 }
 0x6af   : > { %v4942_v11 = vpop.f32.mrf.mxu1 }
 0x6b1   : > { %v2932_v12 = vpop.f32.mrf.mxu1 }
 0x6b2   : > { %4954 = vmatprep.mubr.msk.f32.mxu0 %vm1159_vm2, %v2932_v12 }
 0x6b3   : > { %4955 = vmatmul.mubr.msk.f32.gmra.mxu0 %vm1159_vm2, %v4942_v11 }
 0x6b4   : > { %4971 = vmatprep.mubr.msk.f32.mxu0 %vm1377_vm3, %v5569_v50 }
 0x76b   : > { %v4953_v15 = vpop.f32.mrf.mxu0 }
 0x76c   : > { %v3043_v17 = vadd.f32 %v4953_v15, %v5784_v14 }
 0x76d   : > { %v3023_v18 = vpop.f32.mrf.mxu0 }
 0x76e   : > { %v3047_v19 = vmax.f32 %v3043_v17, 0.0  ;;  %v3042_v20 = vadd.f32 %v3023_v18, %v5786_v16 }
 0x770   : > { %v3046_v27 = vmax.f32 %v3042_v20, 0.0  ;;  %4957 = vmatprep.subr.mxu1 %v3047_v19 }
 0x771   : > { %4958 = vmatpush3.msra.mxu1 %v3047_v19 }
 0x772   : > { %4959 = vmatprep.subr.mxu1 %v3046_v27 }
 0x773   : > { %v4956_v50 = vpop.f32.mrf.mxu0  ;;  %4960 = vmatpush3.msra.mxu1 %v3046_v27 }
 0x774   : > { %v3045_v32 = vadd.f32 %v4956_v50, %v5790_v28  ;;  %4962 = vmatmul.mubr.msk.f32.vlgmr.msra.gmra.mxu1 %vm1377_vm3, %v5515_v24  ;;  %4977 = vmatprep.subr.mxu1 %v3047_v19  ;;  %v3392_v24 = vld [vmem:[%s5993_s6 + $0x10] sm:$0xff] }
 0x775   : > { %v3033_v36 = vpop.f32.mrf.mxu0  ;;  %4978 = vmatpush3.msra.mxu1 %v3047_v19  ;;  %4964 = vmatprep.mubr.msk.f32.mxu1 %vm1377_vm3, %v5518_v25  ;;  %v3391_v25 = vld [vmem:[%s5993_s6 + $0x8] sm:$0xff] }
 0x776   : > { %v3049_v38 = vmax.f32 %v3045_v32, 0.0  ;;  %v3044_v40 = vadd.f32 %v3033_v36, %v5792_v31  ;;  %4979 = vmatprep.subr.mxu1 %v3046_v27 }
 0x777   : > { %4980 = vmatpush3.msra.mxu1 %v3046_v27 }
 0x778   : > { %v3048_v43 = vmax.f32 %v3044_v40, 0.0  ;;  %4965 = vmatmul.mubr.msk.f32.gmra.mxu1 %vm1377_vm3, %v5525_v26  ;;  %4967 = vmatprep.subr.mxu0 %v3049_v38  ;;  %v3390_v26 = vld [vmem:[%s5993_s6] sm:$0xff] }
 0x779   : > { %4968 = vmatpush3.msra.mxu0 %v3049_v38  ;;  %4981 = vmatprep.mubr.msk.f32.mxu1 %vm1377_vm3, %v5537_v29  ;;  %v3534_v29 = vld [vmem:[%s5994_s1 + $0x18] sm:$0xff] }
 0x77a   : > { %4969 = vmatprep.subr.mxu0 %v3048_v43  ;;  %4997 = vmatprep.subr.mxu1 %v3393_v42 }
 0x77b   : > { %4970 = vmatpush3.msra.mxu0 %v3048_v43 }
 0x77c   : > { %4972 = vmatmul.mubr.msk.f32.vlgmr.msra.gmra.mxu0 %vm1377_vm3, %v5578_v51  ;;  %4982 = vmatmul.mubr.msk.f32.vlgmr.msra.gmra.mxu1 %vm1377_vm3, %v5542_v30  ;;  %v3533_v30 = vld [vmem:[%s5994_s1 + $0x10] sm:$0xff] }
 0x77d   : > { %4987 = vmatprep.subr.mxu0 %v3049_v38  ;;  %4974 = vmatprep.mubr.msk.f32.mxu0 %vm1377_vm3, %v5581_v52 }
 0x77e   : > { %4988 = vmatpush3.msra.mxu0 %v3049_v38  ;;  %4984 = vmatprep.mubr.msk.f32.mxu1 %vm1377_vm3, %v5549_v33  ;;  %v3532_v33 = vld [vmem:[%s5994_s1 + $0x8] sm:$0xff] }
 0x77f   : > { %4989 = vmatprep.subr.mxu0 %v3048_v43  ;;  %4998 = vmatpush3.msra.mxu1 %v3393_v42 }
 0x780   : > { %4990 = vmatpush3.msra.mxu0 %v3048_v43  ;;  %4985 = vmatmul.mubr.msk.f32.gmra.mxu1 %vm1377_vm3, %v5554_v34  ;;  %v3531_v34 = vld [vmem:[%s5994_s1] sm:$0xff]  ;;  %s4317_s1 = sshll.u32 %s992_s3, 5 }
 0x781   : > { %4975 = vmatmul.mubr.msk.f32.gmra.mxu0 %vm1377_vm3, %v5588_v53  ;;  %4999 = vmatprep.subr.mxu1 %v3392_v24  ;;  %s994_s5 = scalar_lea.vmem [#allocation2], %s4317_s1  ;;  %s5905_s1 = scalar_lea.sflag [#allocation3], %s992_s3 }
 0x782   : > { %4991 = vmatprep.mubr.msk.f32.mxu0 %vm1377_vm3, %v5594_v55  ;;  %5000 = vmatpush3.msra.mxu1 %v3392_v24  ;;  %s4173_s6 = sshll.u32 %s994_s5, 4  ;;  %s5900_s6 = int_to_ptr.vmem [resolvable:$true] %s4173_s6 }
 0x783   : > { %5001 = vmatprep.subr.mxu1 %v3391_v25  ;;  %5017 = vmatprep.subr.mxu0 %v3534_v29  ;;  %p5179_p2 = scmp.lt.s32.totalorder %s5900_s6, %s5177_s12 }
 0x784   : > { %5002 = vmatpush3.msra.mxu1 %v3391_v25 }
 0x785   : > { %4992 = vmatmul.mubr.msk.f32.vlgmr.msra.gmra.mxu0 %vm1377_vm3, %v5603_v57  ;;  %5003 = vmatprep.subr.mxu1 %v3390_v26 }
 0x786   : > { %4994 = vmatprep.mubr.msk.f32.mxu0 %vm1377_vm3, %v5606_v58  ;;  %5004 = vmatpush3.msra.mxu1 %v3390_v26 }
 0x787   : > { %5018 = vmatpush3.msra.mxu0 %v3534_v29 }
 0x788   : > { %5019 = vmatprep.subr.mxu0 %v3533_v30 }
 0x789   : > { %4995 = vmatmul.mubr.msk.f32.gmra.mxu0 %vm1377_vm3, %v5614_v61 }
 0x78a   : > { %5020 = vmatpush3.msra.mxu0 %v3533_v30 }
 0x78b   : > { %5021 = vmatprep.subr.mxu0 %v3532_v33 }
 0x78c   : > { %5022 = vmatpush3.msra.mxu0 %v3532_v33 }
 0x78d   : > { %5023 = vmatprep.subr.mxu0 %v3531_v34 }
 0x78e   : > { %5024 = vmatpush3.msra.mxu0 %v3531_v34 }
 0x834   : > { %v4963_v51 = vpop.f32.mrf.mxu1 }
 0x836   : > { %v3116_v52 = vpop.f32.mrf.mxu1 }
 0x837   : > { %5005 = vmatprep.mubr.msk.f32.mxu1 %vm1159_vm2, %v3116_v52 }
 0x838   : > { %v4966_v53 = vpop.f32.mrf.mxu1  ;;  %5006 = vmatmul.mubr.msk.f32.vlgmr.msra.gmra.mxu1 %vm1159_vm2, %v4963_v51 }
 0x83a   : > { %v3126_v55 = vpop.f32.mrf.mxu1 }
 0x83b   : > { %5008 = vmatprep.mubr.msk.f32.mxu1 %vm1159_vm2, %v3126_v55  ;;  %v3935_v55 = vld [vmem:[%s5995_s28] sm:$0xff] }
 0x83c   : > { %v4973_v57 = vpop.f32.mrf.mxu0  ;;  %v4983_v58 = vpop.f32.mrf.mxu1  ;;  %5009 = vmatmul.mubr.msk.f32.gmra.mxu1 %vm1159_vm2, %v4966_v53 }
 0x83e   : > { %v3201_v61 = vpop.f32.mrf.mxu0  ;;  %v3286_v6 = vpop.f32.mrf.mxu1 }
 0x83f   : > { %5011 = vmatprep.mubr.msk.f32.mxu1 %vm1159_vm2, %v3201_v61  ;;  %5025 = vmatprep.mubr.msk.f32.mxu0 %vm1159_vm2, %v3286_v6 }
 0x840   : > { %v4986_v44 = vpop.f32.mrf.mxu1  ;;  %5012 = vmatmul.mubr.msk.f32.gmra.mxu1 %vm1159_vm2, %v4973_v57  ;;  %5026 = vmatmul.mubr.msk.f32.vlgmr.msra.gmra.mxu0 %vm1159_vm2, %v4983_v58 }
 0x841   : > { %v4976_v45 = vpop.f32.mrf.mxu0 }
 0x842   : > { %v3296_v8 = vpop.f32.mrf.mxu1 }
 0x843   : > { %v3211_v48 = vpop.f32.mrf.mxu0  ;;  %5028 = vmatprep.mubr.msk.f32.mxu0 %vm1159_vm2, %v3296_v8 }
 0x844   : > { %5014 = vmatprep.mubr.msk.f32.mxu1 %vm1159_vm2, %v3211_v48  ;;  %5029 = vmatmul.mubr.msk.f32.gmra.mxu0 %vm1159_vm2, %v4986_v44 }
 0x845   : > { %v4993_v56 = vpop.f32.mrf.mxu0  ;;  %5015 = vmatmul.mubr.msk.f32.gmra.mxu1 %vm1159_vm2, %v4976_v45 }
 0x846   : > { %5045 = vmatprep.mubr.msk.f32.mxu1 %vm1159_vm2, %v5711_v21 }
 0x847   : > { %v3371_v60 = vpop.f32.mrf.mxu0 }
 0x848   : > { %5031 = vmatprep.mubr.msk.f32.mxu0 %vm1159_vm2, %v3371_v60 }
 0x849   : > { %v4996_v62 = vpop.f32.mrf.mxu0  ;;  %5032 = vmatmul.mubr.msk.f32.gmra.mxu0 %vm1159_vm2, %v4993_v56 }
 0x84b   : > { %v3381_v2 = vpop.f32.mrf.mxu0 }
 0x84c   : > { %5034 = vmatprep.mubr.msk.f32.mxu0 %vm1159_vm2, %v3381_v2  ;;  %v4049_v2 = vld [vmem:[%s5415_s27 + $0x10] sm:$0xff] }
 0x84d   : > { %5035 = vmatmul.mubr.msk.f32.gmra.mxu0 %vm1159_vm2, %v4996_v62 }
 0x84e   : > { %5056 = vmatprep.mubr.msk.f32.mxu0 %vm1159_vm2, %v5716_v22 }
 0x8f8   : > { %v5007_v3 = vpop.f32.mrf.mxu1 }
 0x8f9   : > { %v3524_v17 = vadd.f32 %v5007_v3, %v5723_v37  ;;  %v4048_v3 = vld [vmem:[%s5415_s27 + $0x8] sm:$0xff] }
 0x8fa   : > { %v3484_v4 = vpop.f32.mrf.mxu1 }
 0x8fb   : > { %v3523_v27 = vadd.f32 %v3484_v4, %v5728_v41  ;;  %v4047_v4 = vld [vmem:[%s5415_s27] sm:$0xff] }
 0x8fc   : > { %v5010_v9 = vpop.f32.mrf.mxu1 }
 0x8fd   : > { %v3526_v12 = vadd.f32 %v5010_v9, %v5721_v35 }
 0x8fe   : > { %v3494_v10 = vpop.f32.mrf.mxu1 }
 0x8ff   : > { %v3525_v18 = vadd.f32 %v3494_v10, %v5726_v39 }
 0x900   : > { %v5013_v23 = vpop.f32.mrf.mxu1  ;;  %v5027_v21 = vpop.f32.mrf.mxu0 }
 0x901   : > { %v3665_v22 = vadd.f32 %v5027_v21, %v3524_v17  ;;  %v3528_v41 = vadd.f32 %v5013_v23, %v5738_v47 }
 0x902   : > { %v3625_v11 = vpop.f32.mrf.mxu0  ;;  %v3504_v13 = vpop.f32.mrf.mxu1 }
 0x903   : > { %v3664_v38 = vadd.f32 %v3625_v11, %v3523_v27  ;;  %v3673_v35 = vmax.f32 %v3665_v22, 0.0  ;;  %v3527_v33 = vadd.f32 %v3504_v13, %v5746_v54 }
 0x904   : > { %v5030_v15 = vpop.f32.mrf.mxu0 }
 0x905   : > { %v3667_v19 = vadd.f32 %v5030_v15, %v3526_v12  ;;  %v5016_v50 = vpop.f32.mrf.mxu1  ;;  %v3672_v39 = vmax.f32 %v3664_v38, 0.0 }
 0x906   : > { %v3635_v20 = vpop.f32.mrf.mxu0  ;;  %v3530_v37 = vadd.f32 %v5016_v50, %v5733_v5 }
 0x907   : > { %v3675_v32 = vmax.f32 %v3667_v19, 0.0  ;;  %v3666_v36 = vadd.f32 %v3635_v20, %v3525_v18  ;;  %v3514_v43 = vpop.f32.mrf.mxu1  ;;  %v4486_v20 = vld [vmem:[%s5996_s4] ss:$0 sm:$0xff]  ;;  %s5172_s4 = scalar_lea.vmem %s5900_s6, 512 }
 0x908   : > { %v3529_v26 = vadd.f32 %v3514_v43, %v5741_v7  ;;  %p5173_p13 = scmp.ne.s32.totalorder %s5900_s6, %s5172_s4  ;;  %p5180_p3 = scmp.lt.s32.totalorder %s5178_s13, %s5172_s4 }
 0x909   : > { %v3674_v40 = vmax.f32 %v3666_v36, 0.0  ;;  %v5033_v42 = vpop.f32.mrf.mxu0  ;;  %5037 = vmatprep.subr.mxu1 %v3675_v32 }
 0x90a   : > { %5038 = vmatpush3.msra.mxu1 %v3675_v32  ;;  %v3669_v34 = vadd.f32 %v5033_v42, %v3528_v41  ;;  %p5174_p0 = pnand %p5173_p13, %p5465_p5  ;;  %p5181_p4 = por %p5180_p3, %p5179_p2 }
 0x90b   : > { %v3645_v24 = vpop.f32.mrf.mxu0  ;;  %5039 = vmatprep.subr.mxu1 %v3674_v40 }
 0x90c   : > { %5040 = vmatpush3.msra.mxu1 %v3674_v40  ;;  %v3668_v5 = vadd.f32 %v3645_v24, %v3527_v33  ;;  %v3677_v47 = vmax.f32 %v3669_v34, 0.0  ;;  %p5175_p1 = pneg %p5174_p0 }
 0x90d   : > { %v5036_v25 = vpop.f32.mrf.mxu0  ;;  %5041 = vmatprep.subr.mxu1 %v3673_v35 }
 0x90e   : > { %v3671_v29 = vadd.f32 %v5036_v25, %v3530_v37  ;;  %5042 = vmatpush3.msra.mxu1 %v3673_v35  ;;  %v3676_v7 = vmax.f32 %v3668_v5, 0.0  ;;  %p5182_p7 = pnand %p5181_p4, %p5175_p1 }
 0x90f   : > { %v3655_v30 = vpop.f32.mrf.mxu0  ;;  %5043 = vmatprep.subr.mxu1 %v3672_v39 }
 0x910   : > { %v3679_v51 = vmax.f32 %v3671_v29, 0.0  ;;  %v3670_v52 = vadd.f32 %v3655_v30, %v3529_v26  ;;  %5044 = vmatpush3.msra.mxu1 %v3672_v39 }
 0x911   : > { %5046 = vmatmul.mubr.msk.f32.vlgmr.msra.gmra.mxu1 %vm1159_vm2, %v5736_v46  ;;  %5059 = vmatprep.subr.mxu1 %v5744_v49 }
 0x912   : > { %v3678_v53 = vmax.f32 %v3670_v52, 0.0  ;;  %5048 = vmatprep.subr.mxu0 %v3679_v51  ;;  %5060 = vmatpush3.msra.mxu1 %v5744_v49 }
 0x913   : > { %5049 = vmatpush3.msra.mxu0 %v3679_v51  ;;  %5061 = vmatprep.subr.mxu1 %v5752_v59 }
 0x914   : > { %5050 = vmatprep.subr.mxu0 %v3678_v53  ;;  %5062 = vmatpush3.msra.mxu1 %v5752_v59 }
 0x915   : > { %5051 = vmatpush3.msra.mxu0 %v3678_v53  ;;  %5063 = vmatprep.subr.mxu1 %v5768_v0 }
 0x916   : > { %5052 = vmatprep.subr.mxu0 %v3677_v47  ;;  %5064 = vmatpush3.msra.mxu1 %v5768_v0  ;;  %v3938_v0 = vld [vmem:[%s5995_s28 + $0x18] sm:$0xff] }
 0x917   : > { %5053 = vmatpush3.msra.mxu0 %v3677_v47  ;;  %5065 = vmatprep.subr.mxu1 %v5773_v1 }
 0x918   : > { %5054 = vmatprep.subr.mxu0 %v3676_v7  ;;  %5066 = vmatpush3.msra.mxu1 %v5773_v1  ;;  %v3937_v1 = vld [vmem:[%s5995_s28 + $0x10] sm:$0xff] }
 0x919   : > { %5055 = vmatpush3.msra.mxu0 %v3676_v7 }
 0x91a   : > { %5057 = vmatmul.mubr.msk.f32.vlgmr.msra.gmra.mxu0 %vm1159_vm2, %v5761_v63  ;;  %5073 = vmatprep.subr.mxu0 %v3938_v0  ;;  %v3936_v63 = vld [vmem:[%s5995_s28 + $0x8] sm:$0xff] }
 0x91b   : > { %5074 = vmatpush3.msra.mxu0 %v3938_v0 }
 0x91c   : > { %5075 = vmatprep.subr.mxu0 %v3937_v1 }
 0x91d   : > { %5076 = vmatpush3.msra.mxu0 %v3937_v1 }
 0x91e   : > { %5077 = vmatprep.subr.mxu0 %v3936_v63 }
 0x91f   : > { %5078 = vmatpush3.msra.mxu0 %v3936_v63 }
 0x920   : > { %5079 = vmatprep.subr.mxu0 %v3935_v55 }
 0x921   : > { %5080 = vmatpush3.msra.mxu0 %v3935_v55 }
 0x9d1   : > { %v5047_v46 = vpop.f32.mrf.mxu1 }
 0x9d3   : > { %v3746_v49 = vpop.f32.mrf.mxu1 }
 0x9d4   : > { %5067 = vmatprep.mubr.msk.f32.mxu1 %vm1159_vm2, %v3746_v49 }
 0x9d5   : > { %5068 = vmatmul.mubr.msk.f32.vlgmr.msra.gmra.mxu1 %vm1159_vm2, %v5047_v46 }
 0x9da   : > { %v5058_v54 = vpop.f32.mrf.mxu0 }
 0x9dc   : > { %v3821_v59 = vpop.f32.mrf.mxu0 }
 0x9dd   : > { %5070 = vmatprep.mubr.msk.f32.mxu1 %vm1159_vm2, %v3821_v59 }
 0x9de   : > { %5071 = vmatmul.mubr.msk.f32.gmra.mxu1 %vm1159_vm2, %v5058_v54 }
 0xa95   : > { %v5069_v57 = vpop.f32.mrf.mxu1 }
 0xa96   : > { %v3928_v58 = vadd.f32 %v5069_v57, %v5784_v14 }
 0xa97   : > { %v3908_v61 = vpop.f32.mrf.mxu1 }
 0xa98   : > { %v3927_v6 = vadd.f32 %v3908_v61, %v5786_v16  ;;  %v3932_v45 = vmax.f32 %v3928_v58, 0.0  ;;  %v4050_v16 = vld [vmem:[%s5415_s27 + $0x18] sm:$0xff] }
 0xa99   : > { %5087 = vmatprep.subr.mxu1 %v4050_v16 }
 0xa9a   : > { %v3931_v44 = vmax.f32 %v3927_v6, 0.0  ;;  %5088 = vmatpush3.msra.mxu1 %v4050_v16 }
 0xa9b   : > { %5089 = vmatprep.subr.mxu1 %v4049_v2 }
 0xa9c   : > { %5081 = vmatprep.mubr.msk.f32.mxu0 %vm1159_vm2, %v3931_v44  ;;  %5090 = vmatpush3.msra.mxu1 %v4049_v2 }
 0xa9d   : > { %5082 = vmatmul.mubr.msk.f32.vlgmr.msra.gmra.mxu0 %vm1159_vm2, %v3932_v45  ;;  %5091 = vmatprep.subr.mxu1 %v4048_v3 }
 0xa9e   : > { %v5072_v8 = vpop.f32.mrf.mxu1  ;;  %5092 = vmatpush3.msra.mxu1 %v4048_v3 }
 0xa9f   : > { %v3930_v48 = vadd.f32 %v5072_v8, %v5790_v28  ;;  %5093 = vmatprep.subr.mxu1 %v4047_v4  ;;  %v4481_v28 = vld [vmem:[%s5410_s19] ss:$0 sm:$0xff] }
 0xaa0   : > { %v3918_v56 = vpop.f32.mrf.mxu1  ;;  %5094 = vmatpush3.msra.mxu1 %v4047_v4 }
 0xaa1   : > { %v3929_v60 = vadd.f32 %v3918_v56, %v5792_v31  ;;  %v3934_v14 = vmax.f32 %v3930_v48, 0.0 }
 0xaa3   : > { %v3933_v62 = vmax.f32 %v3929_v60, 0.0 }
 0xaa5   : > { %5084 = vmatprep.mubr.msk.f32.mxu0 %vm1159_vm2, %v3933_v62 }
 0xaa6   : > { %5085 = vmatmul.mubr.msk.f32.gmra.mxu0 %vm1159_vm2, %v3934_v14 }
 0xb5d   : > { %v5083_v31 = vpop.f32.mrf.mxu0 }
 0xb5e   : > { %v4030_v9 = vadd.f32 %v5083_v31, %v4481_v28 }
 0xb5f   : > { %v4024_v10 = vpop.f32.mrf.mxu0 }
 0xb60   : > { %v4025_v23 = vadd.f32 %v4481_v28, %v4024_v10  ;;  %v4044_v11 = vmax.f32 %v4030_v9, 0.0 }
 0xb62   : > { %v4043_v21 = vmax.f32 %v4025_v23, 0.0 }
 0xb64   : > { %5095 = vmatprep.mubr.msk.f32.mxu1 %vm1159_vm2, %v4043_v21 }
 0xb65   : > { %5096 = vmatmul.mubr.msk.f32.vlgmr.msra.gmra.mxu1 %vm1159_vm2, %v4044_v11 }
 0xb66   : > { %v5086_v12 = vpop.f32.mrf.mxu0 }
 0xb67   : > { %v4040_v13 = vadd.f32 %v5086_v12, %v4481_v28 }
 0xb68   : > { %v4034_v15 = vpop.f32.mrf.mxu0 }
 0xb69   : > { %v4035_v17 = vadd.f32 %v4481_v28, %v4034_v15  ;;  %v4046_v19 = vmax.f32 %v4040_v13, 0.0 }
 0xb6b   : > { %v4045_v18 = vmax.f32 %v4035_v17, 0.0 }
 0xb6d   : > { %5098 = vmatprep.mubr.msk.f32.mxu1 %vm1159_vm2, %v4045_v18 }
 0xb6e   : > { %5099 = vmatmul.mubr.msk.f32.gmra.mxu1 %vm1159_vm2, %v4046_v19 }
 0xc25   : > { %v5097_v27 = vpop.f32.mrf.mxu1 }
 0xc26   : > { %v4142_v22 = vadd.f32 %v5097_v27, %v4486_v20 }
 0xc27   : > { %v4136_v50 = vpop.f32.mrf.mxu1 }
 0xc28   : > { %4156 = vst [vmem:[%s994_s5 + $0x8] sm:$0xff] %v4142_v22  ;;  %v4137_v32 = vadd.f32 %v4486_v20, %v4136_v50 }
 0xc2a   : > { %4155 = vst [vmem:[%s994_s5] sm:$0xff] %v4137_v32 }
 0xc2e   : > { %v5100_v36 = vpop.f32.mrf.mxu1 }
 0xc2f   : > { %v4152_v38 = vadd.f32 %v5100_v36, %v4486_v20 }
 0xc30   : > { %v4146_v40 = vpop.f32.mrf.mxu1 }
 0xc31   : > { %4158 = vst [vmem:[%s994_s5 + $0x18] sm:$0xff] %v4152_v38  ;;  %v4147_v42 = vadd.f32 %v4486_v20, %v4146_v40 }
 0xc33   : > { %4157 = vst [vmem:[%s994_s5 + $0x10] sm:$0xff] %v4147_v42 }
 0xc34   : > { %5185 = shalt.err (!%p5182_p7)
}
 0xc35   : > { %s5186_s8 = scalar_lea.hbm %s5903_s11, 512  ;;  %s5190_s5 = scalar_lea.hbm %s5425_s9, 1024 }
 0xc36   : > { %p5187_p8 = scmp.ne.s32.totalorder %s5903_s11, %s5186_s8  ;;  %p5191_p11 = scmp.lt.s32.totalorder %s5903_s11, %s5425_s9 }
 0xc37   : > { %p5192_p12 = scmp.lt.s32.totalorder %s5190_s5, %s5186_s8 }
 0xc38   : > { %p5188_p9 = pnand %p5187_p8, %p5465_p5 }
 0xc39   : > { %p5193_p13 = por %p5192_p12, %p5191_p11 }
 0xc3a   : > { %p5189_p10 = pneg %p5188_p9 }
 0xc3c   : > { %p5194_p0 = pnand %p5193_p13, %p5189_p10 }
 0xc3e   : > { %5197 = shalt.err (!%p5194_p0)
}
 0xc3f   : > { %s5265_s13 = smov 128   ;;  %s5266_s12 = smov 8  }
 0xc40   : > { %5101 = dma.vmem_to_hbm [thread:$0]  (%p5465_p5), %s5900_s6, 512, %s5903_s11, %s5905_s1, %s5265_s13, %s5265_s13, %s5266_s12  }
 0xc41 PF: > { %p5107_p1 = scmp.ge.s32.totalorder %s5232_s22, 2  ;;  %s4188_s4 = sand.u32 1, %s5220_s15  }
 0xc42   : > { %s4189_s3 = scalar_lea.sflag [#allocation3], %s4188_s4 }
 0xc43   : > { %p5104_p2 = pnand %p5107_p1, %p5469_p6 }
 0xc45   : > { %p5105_p3 = pneg %p5104_p2 }
 0xc47   : > { %5215 = dma.done.wait (%p5105_p3), %s4189_s3, 512  }
 0xc48   : > { %5217 = vsyncadd (%p5105_p3), %s4189_s3, 4294966784  ;;  %p71_p4 = scmp.ge.s32.totalorder %s5452_s26, 4   ;;  %s5997_s15 = smov %s5224_s16 }
 0xc49   : > { %s5998_s16 = smov %s5228_s18  ;;  %s5999_s18 = smov %s5463_s2 }
 0xc4a   : > { %s6000_s22 = smov %s5452_s26  ;;  %73 = sbr.rel (!%p71_p4) target bundleno = 58 (0x3a), region = 220 }
 0xc4f   :  { %4194 = vsyncpa [#allocation3], 1 }
 0xc50   :  { %4196 = vsyncpa [#allocation3 + $0x1], 1 }

</bundles_post_ra>
